<compile_context>
chip_gen: v5e
topology: v5e:2x2
jax: 0.10.0
libtpu: 0.0.40
codegen_flags: <defaults>
</compile_context>

<pallas_src>
import jax
import jax.numpy as jnp
from jax.experimental import pallas as pl
from jax.experimental.pallas import tpu as pltpu

LOC_SIZE = 200 * 200 + 1   # self.loc_size
LOC_EMB = 100              # self.loc_emb_size
TSLOT_N, TSLOT_D = 92, 12  # embedding_tslot / embedding_sslot
HIDDEN = 100               # hidden_neurons; STLSTM input is loc_emb (dim 100) => hidden == 100
HIDDEN_PAD = 128           # lane-aligned hidden dim (per gate)
FEAT = LOC_EMB + 2 * TSLOT_D   # 124
FEAT_PAD = 128                 # MXU-aligned K for the bulk matmul


# ----------------------------- Pallas kernel ---------------------------------
def stlstm_sequence(gates_pre, w_hh_bf16, mask_valid, mask_final):
    """Run the ST-LSTM recurrence over all T steps inside one pallas_call.

    gates_pre  : [T, Bp, 4*Hp] f32   precomputed (x@Wih + t_in@Wth + s_in@Wsh + b), gate-padded
    w_hh_bf16  : [Hp, 4*Hp]    bf16  recurrent weights, padded, bf16 for MXU streaming
    mask_valid : [T, Bp, 1]    f32   per-step validity mask (carry state on padded steps)
    mask_final : [T, Bp, 1]    f32   1.0 at t == traj_len[row] (per-row final-h selection)
    returns    : [Bp, Hp]      f32   hidden state at each row's final step
    """
    T, Bp, G = gates_pre.shape
    Hp = G // 4
    assert w_hh_bf16.shape == (Hp, G)
    assert mask_valid.shape == (T, Bp, 1) and mask_final.shape == (T, Bp, 1)

    def _kernel(gp_ref, whh_ref, mv_ref, mf_ref, out_ref):
        whh = whh_ref[...]                       # hoisted: loaded once, reused every step

        def step(t, carry):
            h, c, h_fin = carry                  # vreg-carried state (no VMEM round-trip)
            # Only the recurrent matmul stays in the loop: [Bp,Hp]bf16 @ [Hp,4Hp]bf16 -> f32
            gates = gp_ref[t] + jnp.dot(h.astype(jnp.bfloat16), whh,
                                        preferred_element_type=jnp.float32)
            # gate slices are vreg-aligned (multiples of 128 lanes);
            # sigmoid(x) == 0.5*(1 + tanh(0.5*x)) -> one EUP push per gate
            i_g = 0.5 * (1.0 + jnp.tanh(0.5 * gates[:, 0 * Hp:1 * Hp]))
            f_g = 0.5 * (1.0 + jnp.tanh(0.5 * gates[:, 1 * Hp:2 * Hp]))
            g_g = jnp.tanh(gates[:, 2 * Hp:3 * Hp])
            o_g = 0.5 * (1.0 + jnp.tanh(0.5 * gates[:, 3 * Hp:4 * Hp]))

            c_new = f_g * c + i_g * g_g
            h_new = o_g * jnp.tanh(c_new)

            # lennew[:, t] acts as a per-step validity mask (carry state on padded steps)
            mv = mv_ref[t]                        # [Bp, 1] -> lane-broadcast against [Bp, Hp]
            h_out = jnp.where(mv > 0, h_new, h)
            c_out = jnp.where(mv > 0, c_new, c)

            # capture h at each row's traj_len step (== finalout[i][traj_len[i]])
            mf = mf_ref[t]
            h_fin = jnp.where(mf > 0, h_out, h_fin)
            return (h_out, c_out, h_fin)

        zeros = jnp.zeros((Bp, Hp), jnp.float32)  # h0 = c0 = zeros (matches torch.zeros init)
        _, _, h_fin = jax.lax.fori_loop(0, T, step, (zeros, zeros, zeros), unroll=True)
        out_ref[...] = h_fin                      # single lane-dense writeback

    # TODO(synk): for production T (thousands) on v7x (64 MiB VMEM), switch to
    # grid=(ceil(T/C),) with per-chunk BlockSpecs and h/c in scratch so gates_pre
    # is streamed instead of wholly resident; at tiny T the grid=(1,) form is faster.
    return pl.pallas_call(
        _kernel,
        out_shape=jax.ShapeDtypeStruct((Bp, Hp), jnp.float32),
        grid=(1,),
        in_specs=[
            pl.BlockSpec((T, Bp, G), lambda i: (0, 0, 0)),   # gates_pre (whole array)
            pl.BlockSpec((Hp, G), lambda i: (0, 0)),          # w_hh (bf16)
            pl.BlockSpec((T, Bp, 1), lambda i: (0, 0, 0)),    # validity mask (compact)
            pl.BlockSpec((T, Bp, 1), lambda i: (0, 0, 0)),    # final-step mask (compact)
        ],
        out_specs=pl.BlockSpec((Bp, Hp), lambda i: (0, 0)),
        compiler_params=pltpu.CompilerParams(
            dimension_semantics=("arbitrary",)),              # sequential recurrence
    )(gates_pre, w_hh_bf16, mask_valid, mask_final)


# ----------------------------- parameters ------------------------------------
def init_params(key):
    ks = jax.random.split(key, 8)
    # embeddings (nn.Embedding default: N(0, 1))
    emb_loc = jax.random.normal(ks[0], (LOC_SIZE, LOC_EMB), jnp.float32)
    emb_tslot = jax.random.normal(ks[1], (TSLOT_N, TSLOT_D), jnp.float32)
    emb_sslot = jax.random.normal(ks[2], (TSLOT_N, TSLOT_D), jnp.float32)

    def xavier(k, shape):
        lim = (6.0 / (shape[0] + shape[1])) ** 0.5
        return jax.random.uniform(k, shape, jnp.float32, -lim, lim)

    # weight_ih-like -> xavier_uniform
    w_ih = xavier(ks[3], (LOC_EMB, 4 * HIDDEN))
    w_th = xavier(ks[4], (TSLOT_D, 4 * HIDDEN))
    w_sh = xavier(ks[5], (TSLOT_D, 4 * HIDDEN))
    # weight_hh-like -> orthogonal
    a = jax.random.normal(ks[6], (4 * HIDDEN, HIDDEN), jnp.float32)
    q, _ = jnp.linalg.qr(a)
    w_hh = q.T.astype(jnp.float32)                 # [H, 4H], orthonormal rows
    # biases -> 0
    bias = jnp.zeros((4 * HIDDEN,), jnp.float32)

    return dict(emb_loc=emb_loc, emb_tslot=emb_tslot, emb_sslot=emb_sslot,
                w_ih=w_ih, w_hh=w_hh, w_th=w_th, w_sh=w_sh, bias=bias)


# ----------------------------- forward (glue + kernel) -----------------------
def traj_pre_forward(params, traj, lennew, traj_len, tu, tl, tu_slot, tl_slot,
                     su, sl, su_slot, sl_slot, dropout_key=None, training=True):
    B, T = traj.shape
    H, Hp = HIDDEN, HIDDEN_PAD

    loc_emb = params["emb_loc"][traj]              # [B, T, 100]
    emb_tu = params["emb_tslot"][tu]               # [B, T, 12]
    emb_tl = params["emb_tslot"][tl]
    emb_su = params["emb_sslot"][su]
    emb_sl = params["emb_sslot"][sl]

    # nn.Dropout(p=0.3); identity in eval mode (train/eval switch added per review)
    if training and dropout_key is not None:
        keep = jax.random.bernoulli(dropout_key, 0.7, loc_emb.shape)
        x = jnp.where(keep, loc_emb / 0.7, 0.0).astype(jnp.float32)
    else:
        x = loc_emb.astype(jnp.float32)

    # ST-LSTM linear interpolation between upper / lower slot embeddings (hoisted
    # out of the recurrence); guard zero denominators.
    tud = tu_slot.astype(jnp.float32)[..., None]
    tld = tl_slot.astype(jnp.float32)[..., None]
    sud = su_slot.astype(jnp.float32)[..., None]
    sld = sl_slot.astype(jnp.float32)[..., None]
    t_den = tud + tld
    s_den = sud + sld
    t_in = (emb_tl * tud + emb_tu * tld) / jnp.where(t_den > 0, t_den, 1.0)
    s_in = (emb_sl * sud + emb_su * sld) / jnp.where(s_den > 0, s_den, 1.0)

    # All non-recurrent gate contributions as ONE MXU-aligned batched matmul over the
    # full sequence, emitted directly in kernel order [T, B, 4*Hp].
    feat = jnp.concatenate([x, t_in, s_in], axis=-1)                       # [B, T, 124]
    feat = jnp.pad(feat, ((0, 0), (0, 0), (0, FEAT_PAD - FEAT)))           # K: 124 -> 128

    W_in = jnp.concatenate([params["w_ih"], params["w_th"], params["w_sh"]],
                           axis=0)                                          # [124, 4H]
    W_in = W_in.reshape(FEAT, 4, H)
    W_in = jnp.pad(W_in, ((0, FEAT_PAD - FEAT), (0, 0), (0, Hp - H)))       # [128, 4, 128]
    W_in = W_in.reshape(FEAT_PAD, 4 * Hp)                                   # [128, 512]

    bias_p = jnp.pad(params["bias"].reshape(4, H),
                     ((0, 0), (0, Hp - H))).reshape(1, 1, 4 * Hp)

    gates_pre = jnp.einsum("btf,fg->tbg", feat, W_in,
                           preferred_element_type=jnp.float32) + bias_p     # [T, B, 4Hp]

    # Pad batch to a sublane multiple.  (Perf note: pack many independent trajectories
    # along this axis — up to ~256 — to fill the MXU on v6e/v7x.)
    Bp = -(-B // 8) * 8
    gp = jnp.pad(gates_pre, ((0, 0), (0, Bp - B), (0, 0)))                  # [T, Bp, 4Hp]

    # Recurrent weights [100, 400] -> [128, 512] with per-gate padding, streamed as bf16.
    w_hh_p = params["w_hh"].reshape(H, 4, H)
    w_hh_p = jnp.pad(w_hh_p, ((0, Hp - H), (0, 0), (0, Hp - H))).reshape(Hp, 4 * Hp)
    w_hh_bf16 = w_hh_p.astype(jnp.bfloat16)

    # Compact per-step masks [T, Bp, 1] (broadcast to (Bp, Hp) inside the kernel).
    mask_valid = lennew.astype(jnp.float32).T                               # [T, B]
    mask_valid = jnp.pad(mask_valid, ((0, 0), (0, Bp - B)))[..., None]      # [T, Bp, 1]
    mask_final = (jnp.arange(T)[:, None] == traj_len[None, :]).astype(jnp.float32)
    mask_final = jnp.pad(mask_final, ((0, 0), (0, Bp - B)))[..., None]      # [T, Bp, 1]

    h_final = stlstm_sequence(gp, w_hh_bf16, mask_valid, mask_final)        # [Bp, Hp]

    # == torch: finalout[i][traj_len[i]] stack (selection already done in-kernel).
    hidden_state = h_final[:B, :H]                                          # [B, H]
    return hidden_state


# ----------------------------- main -------------------------------------------
if __name__ == "__main__":
    key = jax.random.PRNGKey(0)
    k_param, k_traj, k_slots, k_drop = jax.random.split(key, 4)

    B = 2
    T = 8                       # number of recurrence steps == max(traj_len) + 1
    traj_len = jnp.array([T - 1, 4], dtype=jnp.int32)   # per-row final-step index

    traj = jax.random.randint(k_traj, (B, T), 0, LOC_SIZE, dtype=jnp.int32)
    ks = jax.random.split(k_slots, 8)
    tu = jax.random.randint(ks[0], (B, T), 0, TSLOT_N, dtype=jnp.int32)
    tl = jax.random.randint(ks[1], (B, T), 0, TSLOT_N, dtype=jnp.int32)
    su = jax.random.randint(ks[2], (B, T), 0, TSLOT_N, dtype=jnp.int32)
    sl = jax.random.randint(ks[3], (B, T), 0, TSLOT_N, dtype=jnp.int32)
    tu_slot = jax.random.randint(ks[4], (B, T), 1, TSLOT_N, dtype=jnp.int32)
    tl_slot = jax.random.randint(ks[5], (B, T), 1, TSLOT_N, dtype=jnp.int32)
    su_slot = jax.random.randint(ks[6], (B, T), 1, TSLOT_N, dtype=jnp.int32)
    sl_slot = jax.random.randint(ks[7], (B, T), 1, TSLOT_N, dtype=jnp.int32)
    lennew = jnp.ones((B, T), dtype=jnp.int32)   # all steps valid

    params = init_params(k_param)

    hidden_state = traj_pre_forward(params, traj, lennew, traj_len,
                                    tu, tl, tu_slot, tl_slot,
                                    su, sl, su_slot, sl_slot,
                                    dropout_key=k_drop, training=True)
    hidden_state = jax.block_until_ready(hidden_state)

    assert hidden_state.shape == (B, HIDDEN)
    assert bool(jnp.all(jnp.isfinite(hidden_state)))
    print("KERNEL_OK")
</pallas_src>

<mosaic_0001>
module attributes {stable_mosaic.version = 11 : i64} {
  func.func @_kernel(%arg0: i32, %arg1: memref<8x8x512xf32, #tpu.memory_space<vmem>>, %arg2: memref<128x512xbf16, #tpu.memory_space<vmem>>, %arg3: memref<8x8x1xf32, #tpu.memory_space<vmem>>, %arg4: memref<8x8x1xf32, #tpu.memory_space<vmem>>, %arg5: memref<8x128xf32, #tpu.memory_space<vmem>>) attributes {dimension_semantics = [#tpu.dimension_semantics<arbitrary>], iteration_bounds = array<i64: 1>, scalar_prefetch = 0 : i64, scratch_operands = 0 : i64, tpu.core_type = #tpu.core_type<tc>, window_params = [{pipeline_mode = #tpu.pipeline_mode<synchronous>, transform_indices = @transform_0, window_bounds = array<i64: 8, 8, 512>}, {pipeline_mode = #tpu.pipeline_mode<synchronous>, transform_indices = @transform_1, window_bounds = array<i64: 128, 512>}, {pipeline_mode = #tpu.pipeline_mode<synchronous>, transform_indices = @transform_2, window_bounds = array<i64: 8, 8, 1>}, {pipeline_mode = #tpu.pipeline_mode<synchronous>, transform_indices = @transform_3, window_bounds = array<i64: 8, 8, 1>}, {pipeline_mode = #tpu.pipeline_mode<synchronous>, transform_indices = @transform_4, window_bounds = array<i64: 8, 128>}]} {
    %c0 = arith.constant 0 : index
    %c0_0 = arith.constant 0 : index
    %0 = vector.load %arg2[%c0, %c0_0] : memref<128x512xbf16, #tpu.memory_space<vmem>>, vector<128x512xbf16>
    %cst = arith.constant 0.000000e+00 : f32
    %1 = vector.broadcast %cst : f32 to vector<8x128xf32>
    %c0_i32 = arith.constant 0 : i32
    %2 = arith.index_cast %c0_i32 : i32 to index
    %c0_1 = arith.constant 0 : index
    %c0_2 = arith.constant 0 : index
    %3 = vector.load %arg1[%2, %c0_1, %c0_2] : memref<8x8x512xf32, #tpu.memory_space<vmem>>, vector<1x8x512xf32>
    %4 = vector.shape_cast %3 : vector<1x8x512xf32> to vector<8x512xf32>
    %5 = arith.truncf %1 : vector<8x128xf32> to vector<8x128xbf16>
    %cst_3 = arith.constant dense<0.000000e+00> : vector<8x512xf32>
    %6 = tpu.matmul %5, %0, %cst_3 {dimension_numbers = #tpu.dot_dimension_numbers<[1], [0], [0], [1], [0, 0, 1, 1], [], []>} : vector<8x128xbf16>, vector<128x512xbf16>, vector<8x512xf32> -> vector<8x512xf32>
    %7 = arith.addf %4, %6 : vector<8x512xf32>
    %8 = vector.extract_strided_slice %7 {offsets = [0, 0], sizes = [8, 128], strides = [1, 1]} : vector<8x512xf32> to vector<8x128xf32>
    %cst_4 = arith.constant 5.000000e-01 : f32
    %9 = vector.broadcast %cst_4 : f32 to vector<8x128xf32>
    %10 = arith.mulf %9, %8 : vector<8x128xf32>
    %11 = math.tanh %10 : vector<8x128xf32>
    %cst_5 = arith.constant 1.000000e+00 : f32
    %12 = vector.broadcast %cst_5 : f32 to vector<8x128xf32>
    %13 = arith.addf %12, %11 : vector<8x128xf32>
    %cst_6 = arith.constant 5.000000e-01 : f32
    %14 = vector.broadcast %cst_6 : f32 to vector<8x128xf32>
    %15 = arith.mulf %14, %13 : vector<8x128xf32>
    %16 = vector.extract_strided_slice %7 {offsets = [0, 128], sizes = [8, 128], strides = [1, 1]} : vector<8x512xf32> to vector<8x128xf32>
    %cst_7 = arith.constant 5.000000e-01 : f32
    %17 = vector.broadcast %cst_7 : f32 to vector<8x128xf32>
    %18 = arith.mulf %17, %16 : vector<8x128xf32>
    %19 = math.tanh %18 : vector<8x128xf32>
    %cst_8 = arith.constant 1.000000e+00 : f32
    %20 = vector.broadcast %cst_8 : f32 to vector<8x128xf32>
    %21 = arith.addf %20, %19 : vector<8x128xf32>
    %cst_9 = arith.constant 5.000000e-01 : f32
    %22 = vector.broadcast %cst_9 : f32 to vector<8x128xf32>
    %23 = arith.mulf %22, %21 : vector<8x128xf32>
    %24 = vector.extract_strided_slice %7 {offsets = [0, 256], sizes = [8, 128], strides = [1, 1]} : vector<8x512xf32> to vector<8x128xf32>
    %25 = math.tanh %24 : vector<8x128xf32>
    %26 = vector.extract_strided_slice %7 {offsets = [0, 384], sizes = [8, 128], strides = [1, 1]} : vector<8x512xf32> to vector<8x128xf32>
    %cst_10 = arith.constant 5.000000e-01 : f32
    %27 = vector.broadcast %cst_10 : f32 to vector<8x128xf32>
    %28 = arith.mulf %27, %26 : vector<8x128xf32>
    %29 = math.tanh %28 : vector<8x128xf32>
    %cst_11 = arith.constant 1.000000e+00 : f32
    %30 = vector.broadcast %cst_11 : f32 to vector<8x128xf32>
    %31 = arith.addf %30, %29 : vector<8x128xf32>
    %cst_12 = arith.constant 5.000000e-01 : f32
    %32 = vector.broadcast %cst_12 : f32 to vector<8x128xf32>
    %33 = arith.mulf %32, %31 : vector<8x128xf32>
    %34 = arith.mulf %23, %1 : vector<8x128xf32>
    %35 = arith.mulf %15, %25 : vector<8x128xf32>
    %36 = arith.addf %34, %35 : vector<8x128xf32>
    %37 = math.tanh %36 : vector<8x128xf32>
    %38 = arith.mulf %33, %37 : vector<8x128xf32>
    %39 = arith.index_cast %c0_i32 : i32 to index
    %c0_13 = arith.constant 0 : index
    %c0_14 = arith.constant 0 : index
    %40 = vector.load %arg3[%39, %c0_13, %c0_14] : memref<8x8x1xf32, #tpu.memory_space<vmem>>, vector<1x8x1xf32>
    %41 = vector.shape_cast %40 : vector<1x8x1xf32> to vector<8x1xf32>
    %cst_15 = arith.constant 0.000000e+00 : f32
    %42 = vector.broadcast %cst_15 : f32 to vector<8x1xf32>
    %43 = arith.cmpf ogt, %41, %42 : vector<8x1xf32>
    %44 = vector.shape_cast %43 : vector<8x1xi1> to vector<8x1xi1>
    %45 = vector.broadcast %44 : vector<8x1xi1> to vector<8x128xi1>
    %46 = arith.select %45, %38, %1 : vector<8x128xi1>, vector<8x128xf32>
    %cst_16 = arith.constant 0.000000e+00 : f32
    %47 = vector.broadcast %cst_16 : f32 to vector<8x1xf32>
    %48 = arith.cmpf ogt, %41, %47 : vector<8x1xf32>
    %49 = vector.shape_cast %48 : vector<8x1xi1> to vector<8x1xi1>
    %50 = vector.broadcast %49 : vector<8x1xi1> to vector<8x128xi1>
    %51 = arith.select %50, %36, %1 : vector<8x128xi1>, vector<8x128xf32>
    %52 = arith.index_cast %c0_i32 : i32 to index
    %c0_17 = arith.constant 0 : index
    %c0_18 = arith.constant 0 : index
    %53 = vector.load %arg4[%52, %c0_17, %c0_18] : memref<8x8x1xf32, #tpu.memory_space<vmem>>, vector<1x8x1xf32>
    %54 = vector.shape_cast %53 : vector<1x8x1xf32> to vector<8x1xf32>
    %cst_19 = arith.constant 0.000000e+00 : f32
    %55 = vector.broadcast %cst_19 : f32 to vector<8x1xf32>
    %56 = arith.cmpf ogt, %54, %55 : vector<8x1xf32>
    %57 = vector.shape_cast %56 : vector<8x1xi1> to vector<8x1xi1>
    %58 = vector.broadcast %57 : vector<8x1xi1> to vector<8x128xi1>
    %59 = arith.select %58, %46, %1 : vector<8x128xi1>, vector<8x128xf32>
    %c1_i32 = arith.constant 1 : i32
    %60 = arith.index_cast %c1_i32 : i32 to index
    %c0_20 = arith.constant 0 : index
    %c0_21 = arith.constant 0 : index
    %61 = vector.load %arg1[%60, %c0_20, %c0_21] : memref<8x8x512xf32, #tpu.memory_space<vmem>>, vector<1x8x512xf32>
    %62 = vector.shape_cast %61 : vector<1x8x512xf32> to vector<8x512xf32>
    %63 = arith.truncf %46 : vector<8x128xf32> to vector<8x128xbf16>
    %cst_22 = arith.constant dense<0.000000e+00> : vector<8x512xf32>
    %64 = tpu.matmul %63, %0, %cst_22 {dimension_numbers = #tpu.dot_dimension_numbers<[1], [0], [0], [1], [0, 0, 1, 1], [], []>} : vector<8x128xbf16>, vector<128x512xbf16>, vector<8x512xf32> -> vector<8x512xf32>
    %65 = arith.addf %62, %64 : vector<8x512xf32>
    %66 = vector.extract_strided_slice %65 {offsets = [0, 0], sizes = [8, 128], strides = [1, 1]} : vector<8x512xf32> to vector<8x128xf32>
    %cst_23 = arith.constant 5.000000e-01 : f32
    %67 = vector.broadcast %cst_23 : f32 to vector<8x128xf32>
    %68 = arith.mulf %67, %66 : vector<8x128xf32>
    %69 = math.tanh %68 : vector<8x128xf32>
    %cst_24 = arith.constant 1.000000e+00 : f32
    %70 = vector.broadcast %cst_24 : f32 to vector<8x128xf32>
    %71 = arith.addf %70, %69 : vector<8x128xf32>
    %cst_25 = arith.constant 5.000000e-01 : f32
    %72 = vector.broadcast %cst_25 : f32 to vector<8x128xf32>
    %73 = arith.mulf %72, %71 : vector<8x128xf32>
    %74 = vector.extract_strided_slice %65 {offsets = [0, 128], sizes = [8, 128], strides = [1, 1]} : vector<8x512xf32> to vector<8x128xf32>
    %cst_26 = arith.constant 5.000000e-01 : f32
    %75 = vector.broadcast %cst_26 : f32 to vector<8x128xf32>
    %76 = arith.mulf %75, %74 : vector<8x128xf32>
    %77 = math.tanh %76 : vector<8x128xf32>
    %cst_27 = arith.constant 1.000000e+00 : f32
    %78 = vector.broadcast %cst_27 : f32 to vector<8x128xf32>
    %79 = arith.addf %78, %77 : vector<8x128xf32>
    %cst_28 = arith.constant 5.000000e-01 : f32
    %80 = vector.broadcast %cst_28 : f32 to vector<8x128xf32>
    %81 = arith.mulf %80, %79 : vector<8x128xf32>
    %82 = vector.extract_strided_slice %65 {offsets = [0, 256], sizes = [8, 128], strides = [1, 1]} : vector<8x512xf32> to vector<8x128xf32>
    %83 = math.tanh %82 : vector<8x128xf32>
    %84 = vector.extract_strided_slice %65 {offsets = [0, 384], sizes = [8, 128], strides = [1, 1]} : vector<8x512xf32> to vector<8x128xf32>
    %cst_29 = arith.constant 5.000000e-01 : f32
    %85 = vector.broadcast %cst_29 : f32 to vector<8x128xf32>
    %86 = arith.mulf %85, %84 : vector<8x128xf32>
    %87 = math.tanh %86 : vector<8x128xf32>
    %cst_30 = arith.constant 1.000000e+00 : f32
    %88 = vector.broadcast %cst_30 : f32 to vector<8x128xf32>
    %89 = arith.addf %88, %87 : vector<8x128xf32>
    %cst_31 = arith.constant 5.000000e-01 : f32
    %90 = vector.broadcast %cst_31 : f32 to vector<8x128xf32>
    %91 = arith.mulf %90, %89 : vector<8x128xf32>
    %92 = arith.mulf %81, %51 : vector<8x128xf32>
    %93 = arith.mulf %73, %83 : vector<8x128xf32>
    %94 = arith.addf %92, %93 : vector<8x128xf32>
    %95 = math.tanh %94 : vector<8x128xf32>
    %96 = arith.mulf %91, %95 : vector<8x128xf32>
    %97 = arith.index_cast %c1_i32 : i32 to index
    %c0_32 = arith.constant 0 : index
    %c0_33 = arith.constant 0 : index
    %98 = vector.load %arg3[%97, %c0_32, %c0_33] : memref<8x8x1xf32, #tpu.memory_space<vmem>>, vector<1x8x1xf32>
    %99 = vector.shape_cast %98 : vector<1x8x1xf32> to vector<8x1xf32>
    %cst_34 = arith.constant 0.000000e+00 : f32
    %100 = vector.broadcast %cst_34 : f32 to vector<8x1xf32>
    %101 = arith.cmpf ogt, %99, %100 : vector<8x1xf32>
    %102 = vector.shape_cast %101 : vector<8x1xi1> to vector<8x1xi1>
    %103 = vector.broadcast %102 : vector<8x1xi1> to vector<8x128xi1>
    %104 = arith.select %103, %96, %46 : vector<8x128xi1>, vector<8x128xf32>
    %cst_35 = arith.constant 0.000000e+00 : f32
    %105 = vector.broadcast %cst_35 : f32 to vector<8x1xf32>
    %106 = arith.cmpf ogt, %99, %105 : vector<8x1xf32>
    %107 = vector.shape_cast %106 : vector<8x1xi1> to vector<8x1xi1>
    %108 = vector.broadcast %107 : vector<8x1xi1> to vector<8x128xi1>
    %109 = arith.select %108, %94, %51 : vector<8x128xi1>, vector<8x128xf32>
    %110 = arith.index_cast %c1_i32 : i32 to index
    %c0_36 = arith.constant 0 : index
    %c0_37 = arith.constant 0 : index
    %111 = vector.load %arg4[%110, %c0_36, %c0_37] : memref<8x8x1xf32, #tpu.memory_space<vmem>>, vector<1x8x1xf32>
    %112 = vector.shape_cast %111 : vector<1x8x1xf32> to vector<8x1xf32>
    %cst_38 = arith.constant 0.000000e+00 : f32
    %113 = vector.broadcast %cst_38 : f32 to vector<8x1xf32>
    %114 = arith.cmpf ogt, %112, %113 : vector<8x1xf32>
    %115 = vector.shape_cast %114 : vector<8x1xi1> to vector<8x1xi1>
    %116 = vector.broadcast %115 : vector<8x1xi1> to vector<8x128xi1>
    %117 = arith.select %116, %104, %59 : vector<8x128xi1>, vector<8x128xf32>
    %c2_i32 = arith.constant 2 : i32
    %118 = arith.index_cast %c2_i32 : i32 to index
    %c0_39 = arith.constant 0 : index
    %c0_40 = arith.constant 0 : index
    %119 = vector.load %arg1[%118, %c0_39, %c0_40] : memref<8x8x512xf32, #tpu.memory_space<vmem>>, vector<1x8x512xf32>
    %120 = vector.shape_cast %119 : vector<1x8x512xf32> to vector<8x512xf32>
    %121 = arith.truncf %104 : vector<8x128xf32> to vector<8x128xbf16>
    %cst_41 = arith.constant dense<0.000000e+00> : vector<8x512xf32>
    %122 = tpu.matmul %121, %0, %cst_41 {dimension_numbers = #tpu.dot_dimension_numbers<[1], [0], [0], [1], [0, 0, 1, 1], [], []>} : vector<8x128xbf16>, vector<128x512xbf16>, vector<8x512xf32> -> vector<8x512xf32>
    %123 = arith.addf %120, %122 : vector<8x512xf32>
    %124 = vector.extract_strided_slice %123 {offsets = [0, 0], sizes = [8, 128], strides = [1, 1]} : vector<8x512xf32> to vector<8x128xf32>
    %cst_42 = arith.constant 5.000000e-01 : f32
    %125 = vector.broadcast %cst_42 : f32 to vector<8x128xf32>
    %126 = arith.mulf %125, %124 : vector<8x128xf32>
    %127 = math.tanh %126 : vector<8x128xf32>
    %cst_43 = arith.constant 1.000000e+00 : f32
    %128 = vector.broadcast %cst_43 : f32 to vector<8x128xf32>
    %129 = arith.addf %128, %127 : vector<8x128xf32>
    %cst_44 = arith.constant 5.000000e-01 : f32
    %130 = vector.broadcast %cst_44 : f32 to vector<8x128xf32>
    %131 = arith.mulf %130, %129 : vector<8x128xf32>
    %132 = vector.extract_strided_slice %123 {offsets = [0, 128], sizes = [8, 128], strides = [1, 1]} : vector<8x512xf32> to vector<8x128xf32>
    %cst_45 = arith.constant 5.000000e-01 : f32
    %133 = vector.broadcast %cst_45 : f32 to vector<8x128xf32>
    %134 = arith.mulf %133, %132 : vector<8x128xf32>
    %135 = math.tanh %134 : vector<8x128xf32>
    %cst_46 = arith.constant 1.000000e+00 : f32
    %136 = vector.broadcast %cst_46 : f32 to vector<8x128xf32>
    %137 = arith.addf %136, %135 : vector<8x128xf32>
    %cst_47 = arith.constant 5.000000e-01 : f32
    %138 = vector.broadcast %cst_47 : f32 to vector<8x128xf32>
    %139 = arith.mulf %138, %137 : vector<8x128xf32>
    %140 = vector.extract_strided_slice %123 {offsets = [0, 256], sizes = [8, 128], strides = [1, 1]} : vector<8x512xf32> to vector<8x128xf32>
    %141 = math.tanh %140 : vector<8x128xf32>
    %142 = vector.extract_strided_slice %123 {offsets = [0, 384], sizes = [8, 128], strides = [1, 1]} : vector<8x512xf32> to vector<8x128xf32>
    %cst_48 = arith.constant 5.000000e-01 : f32
    %143 = vector.broadcast %cst_48 : f32 to vector<8x128xf32>
    %144 = arith.mulf %143, %142 : vector<8x128xf32>
    %145 = math.tanh %144 : vector<8x128xf32>
    %cst_49 = arith.constant 1.000000e+00 : f32
    %146 = vector.broadcast %cst_49 : f32 to vector<8x128xf32>
    %147 = arith.addf %146, %145 : vector<8x128xf32>
    %cst_50 = arith.constant 5.000000e-01 : f32
    %148 = vector.broadcast %cst_50 : f32 to vector<8x128xf32>
    %149 = arith.mulf %148, %147 : vector<8x128xf32>
    %150 = arith.mulf %139, %109 : vector<8x128xf32>
    %151 = arith.mulf %131, %141 : vector<8x128xf32>
    %152 = arith.addf %150, %151 : vector<8x128xf32>
    %153 = math.tanh %152 : vector<8x128xf32>
    %154 = arith.mulf %149, %153 : vector<8x128xf32>
    %155 = arith.index_cast %c2_i32 : i32 to index
    %c0_51 = arith.constant 0 : index
    %c0_52 = arith.constant 0 : index
    %156 = vector.load %arg3[%155, %c0_51, %c0_52] : memref<8x8x1xf32, #tpu.memory_space<vmem>>, vector<1x8x1xf32>
    %157 = vector.shape_cast %156 : vector<1x8x1xf32> to vector<8x1xf32>
    %cst_53 = arith.constant 0.000000e+00 : f32
    %158 = vector.broadcast %cst_53 : f32 to vector<8x1xf32>
    %159 = arith.cmpf ogt, %157, %158 : vector<8x1xf32>
    %160 = vector.shape_cast %159 : vector<8x1xi1> to vector<8x1xi1>
    %161 = vector.broadcast %160 : vector<8x1xi1> to vector<8x128xi1>
    %162 = arith.select %161, %154, %104 : vector<8x128xi1>, vector<8x128xf32>
    %cst_54 = arith.constant 0.000000e+00 : f32
    %163 = vector.broadcast %cst_54 : f32 to vector<8x1xf32>
    %164 = arith.cmpf ogt, %157, %163 : vector<8x1xf32>
    %165 = vector.shape_cast %164 : vector<8x1xi1> to vector<8x1xi1>
    %166 = vector.broadcast %165 : vector<8x1xi1> to vector<8x128xi1>
    %167 = arith.select %166, %152, %109 : vector<8x128xi1>, vector<8x128xf32>
    %168 = arith.index_cast %c2_i32 : i32 to index
    %c0_55 = arith.constant 0 : index
    %c0_56 = arith.constant 0 : index
    %169 = vector.load %arg4[%168, %c0_55, %c0_56] : memref<8x8x1xf32, #tpu.memory_space<vmem>>, vector<1x8x1xf32>
    %170 = vector.shape_cast %169 : vector<1x8x1xf32> to vector<8x1xf32>
    %cst_57 = arith.constant 0.000000e+00 : f32
    %171 = vector.broadcast %cst_57 : f32 to vector<8x1xf32>
    %172 = arith.cmpf ogt, %170, %171 : vector<8x1xf32>
    %173 = vector.shape_cast %172 : vector<8x1xi1> to vector<8x1xi1>
    %174 = vector.broadcast %173 : vector<8x1xi1> to vector<8x128xi1>
    %175 = arith.select %174, %162, %117 : vector<8x128xi1>, vector<8x128xf32>
    %c3_i32 = arith.constant 3 : i32
    %176 = arith.index_cast %c3_i32 : i32 to index
    %c0_58 = arith.constant 0 : index
    %c0_59 = arith.constant 0 : index
    %177 = vector.load %arg1[%176, %c0_58, %c0_59] : memref<8x8x512xf32, #tpu.memory_space<vmem>>, vector<1x8x512xf32>
    %178 = vector.shape_cast %177 : vector<1x8x512xf32> to vector<8x512xf32>
    %179 = arith.truncf %162 : vector<8x128xf32> to vector<8x128xbf16>
    %cst_60 = arith.constant dense<0.000000e+00> : vector<8x512xf32>
    %180 = tpu.matmul %179, %0, %cst_60 {dimension_numbers = #tpu.dot_dimension_numbers<[1], [0], [0], [1], [0, 0, 1, 1], [], []>} : vector<8x128xbf16>, vector<128x512xbf16>, vector<8x512xf32> -> vector<8x512xf32>
    %181 = arith.addf %178, %180 : vector<8x512xf32>
    %182 = vector.extract_strided_slice %181 {offsets = [0, 0], sizes = [8, 128], strides = [1, 1]} : vector<8x512xf32> to vector<8x128xf32>
    %cst_61 = arith.constant 5.000000e-01 : f32
    %183 = vector.broadcast %cst_61 : f32 to vector<8x128xf32>
    %184 = arith.mulf %183, %182 : vector<8x128xf32>
    %185 = math.tanh %184 : vector<8x128xf32>
    %cst_62 = arith.constant 1.000000e+00 : f32
    %186 = vector.broadcast %cst_62 : f32 to vector<8x128xf32>
    %187 = arith.addf %186, %185 : vector<8x128xf32>
    %cst_63 = arith.constant 5.000000e-01 : f32
    %188 = vector.broadcast %cst_63 : f32 to vector<8x128xf32>
    %189 = arith.mulf %188, %187 : vector<8x128xf32>
    %190 = vector.extract_strided_slice %181 {offsets = [0, 128], sizes = [8, 128], strides = [1, 1]} : vector<8x512xf32> to vector<8x128xf32>
    %cst_64 = arith.constant 5.000000e-01 : f32
    %191 = vector.broadcast %cst_64 : f32 to vector<8x128xf32>
    %192 = arith.mulf %191, %190 : vector<8x128xf32>
    %193 = math.tanh %192 : vector<8x128xf32>
    %cst_65 = arith.constant 1.000000e+00 : f32
    %194 = vector.broadcast %cst_65 : f32 to vector<8x128xf32>
    %195 = arith.addf %194, %193 : vector<8x128xf32>
    %cst_66 = arith.constant 5.000000e-01 : f32
    %196 = vector.broadcast %cst_66 : f32 to vector<8x128xf32>
    %197 = arith.mulf %196, %195 : vector<8x128xf32>
    %198 = vector.extract_strided_slice %181 {offsets = [0, 256], sizes = [8, 128], strides = [1, 1]} : vector<8x512xf32> to vector<8x128xf32>
    %199 = math.tanh %198 : vector<8x128xf32>
    %200 = vector.extract_strided_slice %181 {offsets = [0, 384], sizes = [8, 128], strides = [1, 1]} : vector<8x512xf32> to vector<8x128xf32>
    %cst_67 = arith.constant 5.000000e-01 : f32
    %201 = vector.broadcast %cst_67 : f32 to vector<8x128xf32>
    %202 = arith.mulf %201, %200 : vector<8x128xf32>
    %203 = math.tanh %202 : vector<8x128xf32>
    %cst_68 = arith.constant 1.000000e+00 : f32
    %204 = vector.broadcast %cst_68 : f32 to vector<8x128xf32>
    %205 = arith.addf %204, %203 : vector<8x128xf32>
    %cst_69 = arith.constant 5.000000e-01 : f32
    %206 = vector.broadcast %cst_69 : f32 to vector<8x128xf32>
    %207 = arith.mulf %206, %205 : vector<8x128xf32>
    %208 = arith.mulf %197, %167 : vector<8x128xf32>
    %209 = arith.mulf %189, %199 : vector<8x128xf32>
    %210 = arith.addf %208, %209 : vector<8x128xf32>
    %211 = math.tanh %210 : vector<8x128xf32>
    %212 = arith.mulf %207, %211 : vector<8x128xf32>
    %213 = arith.index_cast %c3_i32 : i32 to index
    %c0_70 = arith.constant 0 : index
    %c0_71 = arith.constant 0 : index
    %214 = vector.load %arg3[%213, %c0_70, %c0_71] : memref<8x8x1xf32, #tpu.memory_space<vmem>>, vector<1x8x1xf32>
    %215 = vector.shape_cast %214 : vector<1x8x1xf32> to vector<8x1xf32>
    %cst_72 = arith.constant 0.000000e+00 : f32
    %216 = vector.broadcast %cst_72 : f32 to vector<8x1xf32>
    %217 = arith.cmpf ogt, %215, %216 : vector<8x1xf32>
    %218 = vector.shape_cast %217 : vector<8x1xi1> to vector<8x1xi1>
    %219 = vector.broadcast %218 : vector<8x1xi1> to vector<8x128xi1>
    %220 = arith.select %219, %212, %162 : vector<8x128xi1>, vector<8x128xf32>
    %cst_73 = arith.constant 0.000000e+00 : f32
    %221 = vector.broadcast %cst_73 : f32 to vector<8x1xf32>
    %222 = arith.cmpf ogt, %215, %221 : vector<8x1xf32>
    %223 = vector.shape_cast %222 : vector<8x1xi1> to vector<8x1xi1>
    %224 = vector.broadcast %223 : vector<8x1xi1> to vector<8x128xi1>
    %225 = arith.select %224, %210, %167 : vector<8x128xi1>, vector<8x128xf32>
    %226 = arith.index_cast %c3_i32 : i32 to index
    %c0_74 = arith.constant 0 : index
    %c0_75 = arith.constant 0 : index
    %227 = vector.load %arg4[%226, %c0_74, %c0_75] : memref<8x8x1xf32, #tpu.memory_space<vmem>>, vector<1x8x1xf32>
    %228 = vector.shape_cast %227 : vector<1x8x1xf32> to vector<8x1xf32>
    %cst_76 = arith.constant 0.000000e+00 : f32
    %229 = vector.broadcast %cst_76 : f32 to vector<8x1xf32>
    %230 = arith.cmpf ogt, %228, %229 : vector<8x1xf32>
    %231 = vector.shape_cast %230 : vector<8x1xi1> to vector<8x1xi1>
    %232 = vector.broadcast %231 : vector<8x1xi1> to vector<8x128xi1>
    %233 = arith.select %232, %220, %175 : vector<8x128xi1>, vector<8x128xf32>
    %c4_i32 = arith.constant 4 : i32
    %234 = arith.index_cast %c4_i32 : i32 to index
    %c0_77 = arith.constant 0 : index
    %c0_78 = arith.constant 0 : index
    %235 = vector.load %arg1[%234, %c0_77, %c0_78] : memref<8x8x512xf32, #tpu.memory_space<vmem>>, vector<1x8x512xf32>
    %236 = vector.shape_cast %235 : vector<1x8x512xf32> to vector<8x512xf32>
    %237 = arith.truncf %220 : vector<8x128xf32> to vector<8x128xbf16>
    %cst_79 = arith.constant dense<0.000000e+00> : vector<8x512xf32>
    %238 = tpu.matmul %237, %0, %cst_79 {dimension_numbers = #tpu.dot_dimension_numbers<[1], [0], [0], [1], [0, 0, 1, 1], [], []>} : vector<8x128xbf16>, vector<128x512xbf16>, vector<8x512xf32> -> vector<8x512xf32>
    %239 = arith.addf %236, %238 : vector<8x512xf32>
    %240 = vector.extract_strided_slice %239 {offsets = [0, 0], sizes = [8, 128], strides = [1, 1]} : vector<8x512xf32> to vector<8x128xf32>
    %cst_80 = arith.constant 5.000000e-01 : f32
    %241 = vector.broadcast %cst_80 : f32 to vector<8x128xf32>
    %242 = arith.mulf %241, %240 : vector<8x128xf32>
    %243 = math.tanh %242 : vector<8x128xf32>
    %cst_81 = arith.constant 1.000000e+00 : f32
    %244 = vector.broadcast %cst_81 : f32 to vector<8x128xf32>
    %245 = arith.addf %244, %243 : vector<8x128xf32>
    %cst_82 = arith.constant 5.000000e-01 : f32
    %246 = vector.broadcast %cst_82 : f32 to vector<8x128xf32>
    %247 = arith.mulf %246, %245 : vector<8x128xf32>
    %248 = vector.extract_strided_slice %239 {offsets = [0, 128], sizes = [8, 128], strides = [1, 1]} : vector<8x512xf32> to vector<8x128xf32>
    %cst_83 = arith.constant 5.000000e-01 : f32
    %249 = vector.broadcast %cst_83 : f32 to vector<8x128xf32>
    %250 = arith.mulf %249, %248 : vector<8x128xf32>
    %251 = math.tanh %250 : vector<8x128xf32>
    %cst_84 = arith.constant 1.000000e+00 : f32
    %252 = vector.broadcast %cst_84 : f32 to vector<8x128xf32>
    %253 = arith.addf %252, %251 : vector<8x128xf32>
    %cst_85 = arith.constant 5.000000e-01 : f32
    %254 = vector.broadcast %cst_85 : f32 to vector<8x128xf32>
    %255 = arith.mulf %254, %253 : vector<8x128xf32>
    %256 = vector.extract_strided_slice %239 {offsets = [0, 256], sizes = [8, 128], strides = [1, 1]} : vector<8x512xf32> to vector<8x128xf32>
    %257 = math.tanh %256 : vector<8x128xf32>
    %258 = vector.extract_strided_slice %239 {offsets = [0, 384], sizes = [8, 128], strides = [1, 1]} : vector<8x512xf32> to vector<8x128xf32>
    %cst_86 = arith.constant 5.000000e-01 : f32
    %259 = vector.broadcast %cst_86 : f32 to vector<8x128xf32>
    %260 = arith.mulf %259, %258 : vector<8x128xf32>
    %261 = math.tanh %260 : vector<8x128xf32>
    %cst_87 = arith.constant 1.000000e+00 : f32
    %262 = vector.broadcast %cst_87 : f32 to vector<8x128xf32>
    %263 = arith.addf %262, %261 : vector<8x128xf32>
    %cst_88 = arith.constant 5.000000e-01 : f32
    %264 = vector.broadcast %cst_88 : f32 to vector<8x128xf32>
    %265 = arith.mulf %264, %263 : vector<8x128xf32>
    %266 = arith.mulf %255, %225 : vector<8x128xf32>
    %267 = arith.mulf %247, %257 : vector<8x128xf32>
    %268 = arith.addf %266, %267 : vector<8x128xf32>
    %269 = math.tanh %268 : vector<8x128xf32>
    %270 = arith.mulf %265, %269 : vector<8x128xf32>
    %271 = arith.index_cast %c4_i32 : i32 to index
    %c0_89 = arith.constant 0 : index
    %c0_90 = arith.constant 0 : index
    %272 = vector.load %arg3[%271, %c0_89, %c0_90] : memref<8x8x1xf32, #tpu.memory_space<vmem>>, vector<1x8x1xf32>
    %273 = vector.shape_cast %272 : vector<1x8x1xf32> to vector<8x1xf32>
    %cst_91 = arith.constant 0.000000e+00 : f32
    %274 = vector.broadcast %cst_91 : f32 to vector<8x1xf32>
    %275 = arith.cmpf ogt, %273, %274 : vector<8x1xf32>
    %276 = vector.shape_cast %275 : vector<8x1xi1> to vector<8x1xi1>
    %277 = vector.broadcast %276 : vector<8x1xi1> to vector<8x128xi1>
    %278 = arith.select %277, %270, %220 : vector<8x128xi1>, vector<8x128xf32>
    %cst_92 = arith.constant 0.000000e+00 : f32
    %279 = vector.broadcast %cst_92 : f32 to vector<8x1xf32>
    %280 = arith.cmpf ogt, %273, %279 : vector<8x1xf32>
    %281 = vector.shape_cast %280 : vector<8x1xi1> to vector<8x1xi1>
    %282 = vector.broadcast %281 : vector<8x1xi1> to vector<8x128xi1>
    %283 = arith.select %282, %268, %225 : vector<8x128xi1>, vector<8x128xf32>
    %284 = arith.index_cast %c4_i32 : i32 to index
    %c0_93 = arith.constant 0 : index
    %c0_94 = arith.constant 0 : index
    %285 = vector.load %arg4[%284, %c0_93, %c0_94] : memref<8x8x1xf32, #tpu.memory_space<vmem>>, vector<1x8x1xf32>
    %286 = vector.shape_cast %285 : vector<1x8x1xf32> to vector<8x1xf32>
    %cst_95 = arith.constant 0.000000e+00 : f32
    %287 = vector.broadcast %cst_95 : f32 to vector<8x1xf32>
    %288 = arith.cmpf ogt, %286, %287 : vector<8x1xf32>
    %289 = vector.shape_cast %288 : vector<8x1xi1> to vector<8x1xi1>
    %290 = vector.broadcast %289 : vector<8x1xi1> to vector<8x128xi1>
    %291 = arith.select %290, %278, %233 : vector<8x128xi1>, vector<8x128xf32>
    %c5_i32 = arith.constant 5 : i32
    %292 = arith.index_cast %c5_i32 : i32 to index
    %c0_96 = arith.constant 0 : index
    %c0_97 = arith.constant 0 : index
    %293 = vector.load %arg1[%292, %c0_96, %c0_97] : memref<8x8x512xf32, #tpu.memory_space<vmem>>, vector<1x8x512xf32>
    %294 = vector.shape_cast %293 : vector<1x8x512xf32> to vector<8x512xf32>
    %295 = arith.truncf %278 : vector<8x128xf32> to vector<8x128xbf16>
    %cst_98 = arith.constant dense<0.000000e+00> : vector<8x512xf32>
    %296 = tpu.matmul %295, %0, %cst_98 {dimension_numbers = #tpu.dot_dimension_numbers<[1], [0], [0], [1], [0, 0, 1, 1], [], []>} : vector<8x128xbf16>, vector<128x512xbf16>, vector<8x512xf32> -> vector<8x512xf32>
    %297 = arith.addf %294, %296 : vector<8x512xf32>
    %298 = vector.extract_strided_slice %297 {offsets = [0, 0], sizes = [8, 128], strides = [1, 1]} : vector<8x512xf32> to vector<8x128xf32>
    %cst_99 = arith.constant 5.000000e-01 : f32
    %299 = vector.broadcast %cst_99 : f32 to vector<8x128xf32>
    %300 = arith.mulf %299, %298 : vector<8x128xf32>
    %301 = math.tanh %300 : vector<8x128xf32>
    %cst_100 = arith.constant 1.000000e+00 : f32
    %302 = vector.broadcast %cst_100 : f32 to vector<8x128xf32>
    %303 = arith.addf %302, %301 : vector<8x128xf32>
    %cst_101 = arith.constant 5.000000e-01 : f32
    %304 = vector.broadcast %cst_101 : f32 to vector<8x128xf32>
    %305 = arith.mulf %304, %303 : vector<8x128xf32>
    %306 = vector.extract_strided_slice %297 {offsets = [0, 128], sizes = [8, 128], strides = [1, 1]} : vector<8x512xf32> to vector<8x128xf32>
    %cst_102 = arith.constant 5.000000e-01 : f32
    %307 = vector.broadcast %cst_102 : f32 to vector<8x128xf32>
    %308 = arith.mulf %307, %306 : vector<8x128xf32>
    %309 = math.tanh %308 : vector<8x128xf32>
    %cst_103 = arith.constant 1.000000e+00 : f32
    %310 = vector.broadcast %cst_103 : f32 to vector<8x128xf32>
    %311 = arith.addf %310, %309 : vector<8x128xf32>
    %cst_104 = arith.constant 5.000000e-01 : f32
    %312 = vector.broadcast %cst_104 : f32 to vector<8x128xf32>
    %313 = arith.mulf %312, %311 : vector<8x128xf32>
    %314 = vector.extract_strided_slice %297 {offsets = [0, 256], sizes = [8, 128], strides = [1, 1]} : vector<8x512xf32> to vector<8x128xf32>
    %315 = math.tanh %314 : vector<8x128xf32>
    %316 = vector.extract_strided_slice %297 {offsets = [0, 384], sizes = [8, 128], strides = [1, 1]} : vector<8x512xf32> to vector<8x128xf32>
    %cst_105 = arith.constant 5.000000e-01 : f32
    %317 = vector.broadcast %cst_105 : f32 to vector<8x128xf32>
    %318 = arith.mulf %317, %316 : vector<8x128xf32>
    %319 = math.tanh %318 : vector<8x128xf32>
    %cst_106 = arith.constant 1.000000e+00 : f32
    %320 = vector.broadcast %cst_106 : f32 to vector<8x128xf32>
    %321 = arith.addf %320, %319 : vector<8x128xf32>
    %cst_107 = arith.constant 5.000000e-01 : f32
    %322 = vector.broadcast %cst_107 : f32 to vector<8x128xf32>
    %323 = arith.mulf %322, %321 : vector<8x128xf32>
    %324 = arith.mulf %313, %283 : vector<8x128xf32>
    %325 = arith.mulf %305, %315 : vector<8x128xf32>
    %326 = arith.addf %324, %325 : vector<8x128xf32>
    %327 = math.tanh %326 : vector<8x128xf32>
    %328 = arith.mulf %323, %327 : vector<8x128xf32>
    %329 = arith.index_cast %c5_i32 : i32 to index
    %c0_108 = arith.constant 0 : index
    %c0_109 = arith.constant 0 : index
    %330 = vector.load %arg3[%329, %c0_108, %c0_109] : memref<8x8x1xf32, #tpu.memory_space<vmem>>, vector<1x8x1xf32>
    %331 = vector.shape_cast %330 : vector<1x8x1xf32> to vector<8x1xf32>
    %cst_110 = arith.constant 0.000000e+00 : f32
    %332 = vector.broadcast %cst_110 : f32 to vector<8x1xf32>
    %333 = arith.cmpf ogt, %331, %332 : vector<8x1xf32>
    %334 = vector.shape_cast %333 : vector<8x1xi1> to vector<8x1xi1>
    %335 = vector.broadcast %334 : vector<8x1xi1> to vector<8x128xi1>
    %336 = arith.select %335, %328, %278 : vector<8x128xi1>, vector<8x128xf32>
    %cst_111 = arith.constant 0.000000e+00 : f32
    %337 = vector.broadcast %cst_111 : f32 to vector<8x1xf32>
    %338 = arith.cmpf ogt, %331, %337 : vector<8x1xf32>
    %339 = vector.shape_cast %338 : vector<8x1xi1> to vector<8x1xi1>
    %340 = vector.broadcast %339 : vector<8x1xi1> to vector<8x128xi1>
    %341 = arith.select %340, %326, %283 : vector<8x128xi1>, vector<8x128xf32>
    %342 = arith.index_cast %c5_i32 : i32 to index
    %c0_112 = arith.constant 0 : index
    %c0_113 = arith.constant 0 : index
    %343 = vector.load %arg4[%342, %c0_112, %c0_113] : memref<8x8x1xf32, #tpu.memory_space<vmem>>, vector<1x8x1xf32>
    %344 = vector.shape_cast %343 : vector<1x8x1xf32> to vector<8x1xf32>
    %cst_114 = arith.constant 0.000000e+00 : f32
    %345 = vector.broadcast %cst_114 : f32 to vector<8x1xf32>
    %346 = arith.cmpf ogt, %344, %345 : vector<8x1xf32>
    %347 = vector.shape_cast %346 : vector<8x1xi1> to vector<8x1xi1>
    %348 = vector.broadcast %347 : vector<8x1xi1> to vector<8x128xi1>
    %349 = arith.select %348, %336, %291 : vector<8x128xi1>, vector<8x128xf32>
    %c6_i32 = arith.constant 6 : i32
    %350 = arith.index_cast %c6_i32 : i32 to index
    %c0_115 = arith.constant 0 : index
    %c0_116 = arith.constant 0 : index
    %351 = vector.load %arg1[%350, %c0_115, %c0_116] : memref<8x8x512xf32, #tpu.memory_space<vmem>>, vector<1x8x512xf32>
    %352 = vector.shape_cast %351 : vector<1x8x512xf32> to vector<8x512xf32>
    %353 = arith.truncf %336 : vector<8x128xf32> to vector<8x128xbf16>
    %cst_117 = arith.constant dense<0.000000e+00> : vector<8x512xf32>
    %354 = tpu.matmul %353, %0, %cst_117 {dimension_numbers = #tpu.dot_dimension_numbers<[1], [0], [0], [1], [0, 0, 1, 1], [], []>} : vector<8x128xbf16>, vector<128x512xbf16>, vector<8x512xf32> -> vector<8x512xf32>
    %355 = arith.addf %352, %354 : vector<8x512xf32>
    %356 = vector.extract_strided_slice %355 {offsets = [0, 0], sizes = [8, 128], strides = [1, 1]} : vector<8x512xf32> to vector<8x128xf32>
    %cst_118 = arith.constant 5.000000e-01 : f32
    %357 = vector.broadcast %cst_118 : f32 to vector<8x128xf32>
    %358 = arith.mulf %357, %356 : vector<8x128xf32>
    %359 = math.tanh %358 : vector<8x128xf32>
    %cst_119 = arith.constant 1.000000e+00 : f32
    %360 = vector.broadcast %cst_119 : f32 to vector<8x128xf32>
    %361 = arith.addf %360, %359 : vector<8x128xf32>
    %cst_120 = arith.constant 5.000000e-01 : f32
    %362 = vector.broadcast %cst_120 : f32 to vector<8x128xf32>
    %363 = arith.mulf %362, %361 : vector<8x128xf32>
    %364 = vector.extract_strided_slice %355 {offsets = [0, 128], sizes = [8, 128], strides = [1, 1]} : vector<8x512xf32> to vector<8x128xf32>
    %cst_121 = arith.constant 5.000000e-01 : f32
    %365 = vector.broadcast %cst_121 : f32 to vector<8x128xf32>
    %366 = arith.mulf %365, %364 : vector<8x128xf32>
    %367 = math.tanh %366 : vector<8x128xf32>
    %cst_122 = arith.constant 1.000000e+00 : f32
    %368 = vector.broadcast %cst_122 : f32 to vector<8x128xf32>
    %369 = arith.addf %368, %367 : vector<8x128xf32>
    %cst_123 = arith.constant 5.000000e-01 : f32
    %370 = vector.broadcast %cst_123 : f32 to vector<8x128xf32>
    %371 = arith.mulf %370, %369 : vector<8x128xf32>
    %372 = vector.extract_strided_slice %355 {offsets = [0, 256], sizes = [8, 128], strides = [1, 1]} : vector<8x512xf32> to vector<8x128xf32>
    %373 = math.tanh %372 : vector<8x128xf32>
    %374 = vector.extract_strided_slice %355 {offsets = [0, 384], sizes = [8, 128], strides = [1, 1]} : vector<8x512xf32> to vector<8x128xf32>
    %cst_124 = arith.constant 5.000000e-01 : f32
    %375 = vector.broadcast %cst_124 : f32 to vector<8x128xf32>
    %376 = arith.mulf %375, %374 : vector<8x128xf32>
    %377 = math.tanh %376 : vector<8x128xf32>
    %cst_125 = arith.constant 1.000000e+00 : f32
    %378 = vector.broadcast %cst_125 : f32 to vector<8x128xf32>
    %379 = arith.addf %378, %377 : vector<8x128xf32>
    %cst_126 = arith.constant 5.000000e-01 : f32
    %380 = vector.broadcast %cst_126 : f32 to vector<8x128xf32>
    %381 = arith.mulf %380, %379 : vector<8x128xf32>
    %382 = arith.mulf %371, %341 : vector<8x128xf32>
    %383 = arith.mulf %363, %373 : vector<8x128xf32>
    %384 = arith.addf %382, %383 : vector<8x128xf32>
    %385 = math.tanh %384 : vector<8x128xf32>
    %386 = arith.mulf %381, %385 : vector<8x128xf32>
    %387 = arith.index_cast %c6_i32 : i32 to index
    %c0_127 = arith.constant 0 : index
    %c0_128 = arith.constant 0 : index
    %388 = vector.load %arg3[%387, %c0_127, %c0_128] : memref<8x8x1xf32, #tpu.memory_space<vmem>>, vector<1x8x1xf32>
    %389 = vector.shape_cast %388 : vector<1x8x1xf32> to vector<8x1xf32>
    %cst_129 = arith.constant 0.000000e+00 : f32
    %390 = vector.broadcast %cst_129 : f32 to vector<8x1xf32>
    %391 = arith.cmpf ogt, %389, %390 : vector<8x1xf32>
    %392 = vector.shape_cast %391 : vector<8x1xi1> to vector<8x1xi1>
    %393 = vector.broadcast %392 : vector<8x1xi1> to vector<8x128xi1>
    %394 = arith.select %393, %386, %336 : vector<8x128xi1>, vector<8x128xf32>
    %cst_130 = arith.constant 0.000000e+00 : f32
    %395 = vector.broadcast %cst_130 : f32 to vector<8x1xf32>
    %396 = arith.cmpf ogt, %389, %395 : vector<8x1xf32>
    %397 = vector.shape_cast %396 : vector<8x1xi1> to vector<8x1xi1>
    %398 = vector.broadcast %397 : vector<8x1xi1> to vector<8x128xi1>
    %399 = arith.select %398, %384, %341 : vector<8x128xi1>, vector<8x128xf32>
    %400 = arith.index_cast %c6_i32 : i32 to index
    %c0_131 = arith.constant 0 : index
    %c0_132 = arith.constant 0 : index
    %401 = vector.load %arg4[%400, %c0_131, %c0_132] : memref<8x8x1xf32, #tpu.memory_space<vmem>>, vector<1x8x1xf32>
    %402 = vector.shape_cast %401 : vector<1x8x1xf32> to vector<8x1xf32>
    %cst_133 = arith.constant 0.000000e+00 : f32
    %403 = vector.broadcast %cst_133 : f32 to vector<8x1xf32>
    %404 = arith.cmpf ogt, %402, %403 : vector<8x1xf32>
    %405 = vector.shape_cast %404 : vector<8x1xi1> to vector<8x1xi1>
    %406 = vector.broadcast %405 : vector<8x1xi1> to vector<8x128xi1>
    %407 = arith.select %406, %394, %349 : vector<8x128xi1>, vector<8x128xf32>
    %c7_i32 = arith.constant 7 : i32
    %408 = arith.index_cast %c7_i32 : i32 to index
    %c0_134 = arith.constant 0 : index
    %c0_135 = arith.constant 0 : index
    %409 = vector.load %arg1[%408, %c0_134, %c0_135] : memref<8x8x512xf32, #tpu.memory_space<vmem>>, vector<1x8x512xf32>
    %410 = vector.shape_cast %409 : vector<1x8x512xf32> to vector<8x512xf32>
    %411 = arith.truncf %394 : vector<8x128xf32> to vector<8x128xbf16>
    %cst_136 = arith.constant dense<0.000000e+00> : vector<8x512xf32>
    %412 = tpu.matmul %411, %0, %cst_136 {dimension_numbers = #tpu.dot_dimension_numbers<[1], [0], [0], [1], [0, 0, 1, 1], [], []>} : vector<8x128xbf16>, vector<128x512xbf16>, vector<8x512xf32> -> vector<8x512xf32>
    %413 = arith.addf %410, %412 : vector<8x512xf32>
    %414 = vector.extract_strided_slice %413 {offsets = [0, 0], sizes = [8, 128], strides = [1, 1]} : vector<8x512xf32> to vector<8x128xf32>
    %cst_137 = arith.constant 5.000000e-01 : f32
    %415 = vector.broadcast %cst_137 : f32 to vector<8x128xf32>
    %416 = arith.mulf %415, %414 : vector<8x128xf32>
    %417 = math.tanh %416 : vector<8x128xf32>
    %cst_138 = arith.constant 1.000000e+00 : f32
    %418 = vector.broadcast %cst_138 : f32 to vector<8x128xf32>
    %419 = arith.addf %418, %417 : vector<8x128xf32>
    %cst_139 = arith.constant 5.000000e-01 : f32
    %420 = vector.broadcast %cst_139 : f32 to vector<8x128xf32>
    %421 = arith.mulf %420, %419 : vector<8x128xf32>
    %422 = vector.extract_strided_slice %413 {offsets = [0, 128], sizes = [8, 128], strides = [1, 1]} : vector<8x512xf32> to vector<8x128xf32>
    %cst_140 = arith.constant 5.000000e-01 : f32
    %423 = vector.broadcast %cst_140 : f32 to vector<8x128xf32>
    %424 = arith.mulf %423, %422 : vector<8x128xf32>
    %425 = math.tanh %424 : vector<8x128xf32>
    %cst_141 = arith.constant 1.000000e+00 : f32
    %426 = vector.broadcast %cst_141 : f32 to vector<8x128xf32>
    %427 = arith.addf %426, %425 : vector<8x128xf32>
    %cst_142 = arith.constant 5.000000e-01 : f32
    %428 = vector.broadcast %cst_142 : f32 to vector<8x128xf32>
    %429 = arith.mulf %428, %427 : vector<8x128xf32>
    %430 = vector.extract_strided_slice %413 {offsets = [0, 256], sizes = [8, 128], strides = [1, 1]} : vector<8x512xf32> to vector<8x128xf32>
    %431 = math.tanh %430 : vector<8x128xf32>
    %432 = vector.extract_strided_slice %413 {offsets = [0, 384], sizes = [8, 128], strides = [1, 1]} : vector<8x512xf32> to vector<8x128xf32>
    %cst_143 = arith.constant 5.000000e-01 : f32
    %433 = vector.broadcast %cst_143 : f32 to vector<8x128xf32>
    %434 = arith.mulf %433, %432 : vector<8x128xf32>
    %435 = math.tanh %434 : vector<8x128xf32>
    %cst_144 = arith.constant 1.000000e+00 : f32
    %436 = vector.broadcast %cst_144 : f32 to vector<8x128xf32>
    %437 = arith.addf %436, %435 : vector<8x128xf32>
    %cst_145 = arith.constant 5.000000e-01 : f32
    %438 = vector.broadcast %cst_145 : f32 to vector<8x128xf32>
    %439 = arith.mulf %438, %437 : vector<8x128xf32>
    %440 = arith.mulf %429, %399 : vector<8x128xf32>
    %441 = arith.mulf %421, %431 : vector<8x128xf32>
    %442 = arith.addf %440, %441 : vector<8x128xf32>
    %443 = math.tanh %442 : vector<8x128xf32>
    %444 = arith.mulf %439, %443 : vector<8x128xf32>
    %445 = arith.index_cast %c7_i32 : i32 to index
    %c0_146 = arith.constant 0 : index
    %c0_147 = arith.constant 0 : index
    %446 = vector.load %arg3[%445, %c0_146, %c0_147] : memref<8x8x1xf32, #tpu.memory_space<vmem>>, vector<1x8x1xf32>
    %447 = vector.shape_cast %446 : vector<1x8x1xf32> to vector<8x1xf32>
    %cst_148 = arith.constant 0.000000e+00 : f32
    %448 = vector.broadcast %cst_148 : f32 to vector<8x1xf32>
    %449 = arith.cmpf ogt, %447, %448 : vector<8x1xf32>
    %450 = vector.shape_cast %449 : vector<8x1xi1> to vector<8x1xi1>
    %451 = vector.broadcast %450 : vector<8x1xi1> to vector<8x128xi1>
    %452 = arith.select %451, %444, %394 : vector<8x128xi1>, vector<8x128xf32>
    %cst_149 = arith.constant 0.000000e+00 : f32
    %453 = vector.broadcast %cst_149 : f32 to vector<8x1xf32>
    %454 = arith.cmpf ogt, %447, %453 : vector<8x1xf32>
    %455 = vector.shape_cast %454 : vector<8x1xi1> to vector<8x1xi1>
    %456 = vector.broadcast %455 : vector<8x1xi1> to vector<8x128xi1>
    %457 = arith.select %456, %442, %399 : vector<8x128xi1>, vector<8x128xf32>
    %458 = arith.index_cast %c7_i32 : i32 to index
    %c0_150 = arith.constant 0 : index
    %c0_151 = arith.constant 0 : index
    %459 = vector.load %arg4[%458, %c0_150, %c0_151] : memref<8x8x1xf32, #tpu.memory_space<vmem>>, vector<1x8x1xf32>
    %460 = vector.shape_cast %459 : vector<1x8x1xf32> to vector<8x1xf32>
    %cst_152 = arith.constant 0.000000e+00 : f32
    %461 = vector.broadcast %cst_152 : f32 to vector<8x1xf32>
    %462 = arith.cmpf ogt, %460, %461 : vector<8x1xf32>
    %463 = vector.shape_cast %462 : vector<8x1xi1> to vector<8x1xi1>
    %464 = vector.broadcast %463 : vector<8x1xi1> to vector<8x128xi1>
    %465 = arith.select %464, %452, %407 : vector<8x128xi1>, vector<8x128xf32>
    %c8_i32 = arith.constant 8 : i32
    %c0_153 = arith.constant 0 : index
    %c0_154 = arith.constant 0 : index
    %466 = vector.load %arg5[%c0_153, %c0_154] : memref<8x128xf32, #tpu.memory_space<vmem>>, vector<8x128xf32>
    tpu.vector_store %arg5[%c0_153, %c0_154], %465 {strides = array<i32>} : memref<8x128xf32, #tpu.memory_space<vmem>>, vector<8x128xf32>,
    return
  }
  func.func @transform_0(%arg0: i32) -> (i32, i32, i32) {
    %c0_i32 = arith.constant 0 : i32
    %c0_i32_0 = arith.constant 0 : i32
    %c0_i32_1 = arith.constant 0 : i32
    %c0_i32_2 = arith.constant 0 : i32
    return %c0_i32, %c0_i32_0, %c0_i32_1 : i32, i32, i32
  }
  func.func @transform_1(%arg0: i32) -> (i32, i32) {
    %c0_i32 = arith.constant 0 : i32
    %c0_i32_0 = arith.constant 0 : i32
    %c0_i32_1 = arith.constant 0 : i32
    return %c0_i32, %c0_i32_0 : i32, i32
  }
  func.func @transform_2(%arg0: i32) -> (i32, i32, i32) {
    %c0_i32 = arith.constant 0 : i32
    %c0_i32_0 = arith.constant 0 : i32
    %c0_i32_1 = arith.constant 0 : i32
    %c0_i32_2 = arith.constant 0 : i32
    return %c0_i32, %c0_i32_0, %c0_i32_1 : i32, i32, i32
  }
  func.func @transform_3(%arg0: i32) -> (i32, i32, i32) {
    %c0_i32 = arith.constant 0 : i32
    %c0_i32_0 = arith.constant 0 : i32
    %c0_i32_1 = arith.constant 0 : i32
    %c0_i32_2 = arith.constant 0 : i32
    return %c0_i32, %c0_i32_0, %c0_i32_1 : i32, i32, i32
  }
  func.func @transform_4(%arg0: i32) -> (i32, i32) {
    %c0_i32 = arith.constant 0 : i32
    %c0_i32_0 = arith.constant 0 : i32
    %c0_i32_1 = arith.constant 0 : i32
    return %c0_i32, %c0_i32_0 : i32, i32
  }
}

</mosaic_0001>

<bundles_post_ra>
// kernel: tpu_custom_call.1
= control target key start
LH: loop header
LB: loop body
LE: loop exit
PB: predicated region body
PF: predicated region fallthrough
CT: control target
= control target key end

     0   :  { %9 = vsyncpa [#allocation3], 0  ;;  %s1897_s0 = inlined_call_operand.hbm [shape: f32[8,8,512], index: 0, kind: input, shape index: {}]   ;;  %s1898_s1 = inlined_call_operand.hbm [shape: bf16[128,512], index: 1, kind: input, shape index: {}]   ;;  %s1899_s2 = inlined_call_operand.vmem [shape: f32[8,8,1], index: 2, kind: input, shape index: {}]   ;;  %s1900_s3 = inlined_call_operand.vmem [shape: f32[8,8,1], index: 3, kind: input, shape index: {}]   ;;  %s1901_s4 = inlined_call_operand.hbm [shape: f32[8,128], index: 4, kind: output, shape index: {}]  }
   0x1   :  { %10 = vsyncpa [#allocation6], 0 }
   0x2   :  { %11 = vsyncpa [#allocation4], 0  ;;  %s16_s17 = sshll.u32 %s1897_s0, 4  ;;  %s1404_s18 = smov [#allocation2]   ;;  %s17_s17 = int_to_ptr.hbm [resolvable:$true] %s16_s17 }
   0x3   :  { %s18_s19 = sshll.u32 %s1404_s18, 4  ;;  %s29_s22 = sshll.u32 %s1898_s1, 4  ;;  %s19_s19 = int_to_ptr.vmem [resolvable:$true] %s18_s19  ;;  %s30_s22 = int_to_ptr.hbm [resolvable:$true] %s29_s22 }
   0x4   :  { %s1405_s23 = smov 512   ;;  %s1406_s24 = smov 32  }
   0x5   :  { %24 = dma.hbm_to_vmem [thread:$0]  %s17_s17, 4096, %s19_s19, [#allocation3], %s1405_s23, %s1405_s23, %s1406_s24  }
   0x6   :  { %s1407_s25 = smov [#allocation5]   ;;  %s1408_s27 = smov 256  }
   0x7   :  { %s31_s26 = sshll.u32 %s1407_s25, 4  ;;  %s1409_s28 = smov 16   ;;  %s32_s26 = int_to_ptr.vmem [resolvable:$true] %s31_s26 }
   0x8   :  { %37 = dma.hbm_to_vmem [thread:$0]  %s30_s22, 4096, %s32_s26, [#allocation6], %s1408_s27, %s1408_s27, %s1409_s28  }
   0x9   :  { %1398 = dma.done.wait [#allocation3], 4096  }
   0xa   :  { %1399 = vsyncadd [#allocation3], 4294963200 }
   0xb   :  { %1400 = dma.done.wait [#allocation6], 4096  }
   0xc   :  { %1401 = vsyncadd [#allocation6], 4294963200  ;;  %v1163_v0 = vld [vmem:[#allocation5 + $0xe0] sm:$0xf]  ;;  %v1233_v1 = vld [vmem:[#allocation5 + $0xec] sm:$0xf0] }
   0xd   :  { %v1231_v2 = vld [vmem:[#allocation5 + $0xe4] sm:$0xf]  ;;  %v1443_v3 = vor.u32 %v1233_v1, %v1163_v0  ;;  %v1165_v4 = vld [vmem:[#allocation5 + $0xf0] sm:$0xf0]  ;;  %v1171_v5 = vld [vmem:[#allocation5 + $0xe8] sm:$0xf] }
   0xe   :  { %v1234_v6 = vld [vmem:[#allocation5 + $0xf4] sm:$0xf0]  ;;  %v1445_v7 = vor.u32 %v1231_v2, %v1165_v4  ;;  %v1232_v9 = vld [vmem:[#allocation5 + $0xec] sm:$0xf]  ;;  %v1173_v10 = vld [vmem:[#allocation5 + $0xf8] sm:$0xf0] }
   0xf   :  { %v1447_v8 = vor.u32 %v1234_v6, %v1171_v5  ;;  %v1147_v11 = vld [vmem:[#allocation5 + $0xc0] sm:$0xf]  ;;  %247 = vmatpush.bf16.msra.mxu0 %v1443_v3  ;;  %v1450_v12 = vor.u32 %v1232_v9, %v1173_v10  ;;  %v1229_v13 = vld [vmem:[#allocation5 + $0xcc] sm:$0xf0]  ;;  %v1227_v14 = vld [vmem:[#allocation5 + $0xc4] sm:$0xf] }
  0x10   :  { %v1149_v15 = vld [vmem:[#allocation5 + $0xd0] sm:$0xf0]  ;;  %260 = vmatpush.bf16.msra.mxu1 %v1445_v7  ;;  %v1454_v16 = vor.u32 %v1229_v13, %v1147_v11  ;;  %v1155_v18 = vld [vmem:[#allocation5 + $0xc8] sm:$0xf]  ;;  %v1230_v19 = vld [vmem:[#allocation5 + $0xd4] sm:$0xf0] }
  0x11   :  { %273 = vmatpush.bf16.msra.mxu2 %v1447_v8  ;;  %v1456_v17 = vor.u32 %v1227_v14, %v1149_v15  ;;  %v1228_v20 = vld [vmem:[#allocation5 + $0xcc] sm:$0xf]  ;;  %286 = vmatpush.bf16.msra.mxu3 %v1450_v12  ;;  %v1459_v21 = vor.u32 %v1230_v19, %v1155_v18  ;;  %v1157_v22 = vld [vmem:[#allocation5 + $0xd8] sm:$0xf0]  ;;  %v1131_v23 = vld [vmem:[#allocation5 + $0xa0] sm:$0xf] }
  0x12   :  { %v1225_v24 = vld [vmem:[#allocation5 + $0xac] sm:$0xf0]  ;;  %v1461_v25 = vor.u32 %v1228_v20, %v1157_v22  ;;  %v1223_v26 = vld [vmem:[#allocation5 + $0xa4] sm:$0xf]  ;;  %v1133_v27 = vld [vmem:[#allocation5 + $0xb0] sm:$0xf0] }
  0x13   :  { %v1139_v28 = vld [vmem:[#allocation5 + $0xa8] sm:$0xf]  ;;  %248 = vmatpush.bf16.msra.mxu0 %v1454_v16  ;;  %v1464_v29 = vor.u32 %v1225_v24, %v1131_v23  ;;  %v1226_v30 = vld [vmem:[#allocation5 + $0xb4] sm:$0xf0]  ;;  %v1224_v31 = vld [vmem:[#allocation5 + $0xac] sm:$0xf]  ;;  %v1468_v33 = vor.u32 %v1223_v26, %v1133_v27 }
  0x14   :  { %v1141_v32 = vld [vmem:[#allocation5 + $0xb8] sm:$0xf0]  ;;  %261 = vmatpush.bf16.msra.mxu1 %v1456_v17  ;;  %v1470_v34 = vor.u32 %v1226_v30, %v1139_v28  ;;  %v1115_v35 = vld [vmem:[#allocation5 + $0x80] sm:$0xf]  ;;  %v1221_v36 = vld [vmem:[#allocation5 + $0x8c] sm:$0xf0] }
  0x15   :  { %274 = vmatpush.bf16.msra.mxu2 %v1459_v21  ;;  %v1219_v37 = vld [vmem:[#allocation5 + $0x84] sm:$0xf]  ;;  %287 = vmatpush.bf16.msra.mxu3 %v1461_v25  ;;  %v1473_v38 = vor.u32 %v1224_v31, %v1141_v32  ;;  %v1117_v39 = vld [vmem:[#allocation5 + $0x90] sm:$0xf0]  ;;  %v1123_v40 = vld [vmem:[#allocation5 + $0x88] sm:$0xf]  ;;  %v1476_v44 = vor.u32 %v1221_v36, %v1115_v35 }
  0x16   :  { %v1222_v41 = vld [vmem:[#allocation5 + $0x94] sm:$0xf0]  ;;  %v1220_v42 = vld [vmem:[#allocation5 + $0x8c] sm:$0xf]  ;;  %v1125_v43 = vld [vmem:[#allocation5 + $0x98] sm:$0xf0]  ;;  %v1480_v45 = vor.u32 %v1219_v37, %v1117_v39 }
  0x17   :  { %249 = vmatpush.bf16.msra.mxu0 %v1464_v29  ;;  %v1482_v46 = vor.u32 %v1222_v41, %v1123_v40  ;;  %v1099_v47 = vld [vmem:[#allocation5 + $0x60] sm:$0xf]  ;;  %v1217_v48 = vld [vmem:[#allocation5 + $0x6c] sm:$0xf0]  ;;  %v1215_v49 = vld [vmem:[#allocation5 + $0x64] sm:$0xf]  ;;  %v1485_v50 = vor.u32 %v1220_v42, %v1125_v43 }
  0x18   :  { %262 = vmatpush.bf16.msra.mxu1 %v1468_v33  ;;  %v1101_v51 = vld [vmem:[#allocation5 + $0x70] sm:$0xf0]  ;;  %v1107_v52 = vld [vmem:[#allocation5 + $0x68] sm:$0xf]  ;;  %v1218_v53 = vld [vmem:[#allocation5 + $0x74] sm:$0xf0]  ;;  %v1488_v56 = vor.u32 %v1217_v48, %v1099_v47 }
  0x19   :  { %275 = vmatpush.bf16.msra.mxu2 %v1470_v34  ;;  %288 = vmatpush.bf16.msra.mxu3 %v1473_v38  ;;  %v1216_v54 = vld [vmem:[#allocation5 + $0x6c] sm:$0xf]  ;;  %v1109_v55 = vld [vmem:[#allocation5 + $0x78] sm:$0xf0]  ;;  %v1492_v57 = vor.u32 %v1215_v49, %v1101_v51  ;;  %v1494_v58 = vor.u32 %v1218_v53, %v1107_v52  ;;  %v1083_v59 = vld [vmem:[#allocation5 + $0x40] sm:$0xf] }
  0x1a   :  { %v1213_v60 = vld [vmem:[#allocation5 + $0x4c] sm:$0xf0]  ;;  %v1211_v61 = vld [vmem:[#allocation5 + $0x44] sm:$0xf]  ;;  %v1497_v62 = vor.u32 %v1216_v54, %v1109_v55  ;;  %v1085_v63 = vld [vmem:[#allocation5 + $0x50] sm:$0xf0] }
  0x1b   :  { %250 = vmatpush.bf16.msra.mxu0 %v1476_v44  ;;  %v1091_v0 = vld [vmem:[#allocation5 + $0x48] sm:$0xf]  ;;  %v1214_v1 = vld [vmem:[#allocation5 + $0x54] sm:$0xf0]  ;;  %v1212_v2 = vld [vmem:[#allocation5 + $0x4c] sm:$0xf]  ;;  %v1500_v5 = vor.u32 %v1213_v60, %v1083_v59  ;;  %v1504_v9 = vor.u32 %v1211_v61, %v1085_v63 }
  0x1c   :  { %263 = vmatpush.bf16.msra.mxu1 %v1480_v45  ;;  %v1093_v4 = vld [vmem:[#allocation5 + $0x58] sm:$0xf0]  ;;  %v1067_v6 = vld [vmem:[#allocation5 + $0x20] sm:$0xf]  ;;  %v1506_v10 = vor.u32 %v1214_v1, %v1091_v0  ;;  %v1209_v11 = vld [vmem:[#allocation5 + $0x2c] sm:$0xf0] }
  0x1d   :  { %276 = vmatpush.bf16.msra.mxu2 %v1482_v46  ;;  %289 = vmatpush.bf16.msra.mxu3 %v1485_v50  ;;  %v1207_v13 = vld [vmem:[#allocation5 + $0x24] sm:$0xf]  ;;  %v1069_v14 = vld [vmem:[#allocation5 + $0x30] sm:$0xf0]  ;;  %v1509_v15 = vor.u32 %v1212_v2, %v1093_v4  ;;  %v1075_v18 = vld [vmem:[#allocation5 + $0x28] sm:$0xf]  ;;  %v1520_v27 = vor.u32 %v1209_v11, %v1067_v6 }
  0x1e   :  { %v1210_v19 = vld [vmem:[#allocation5 + $0x34] sm:$0xf0]  ;;  %v321_v20 = vld [vmem:[%s1899_s2] sm:$0xff]  ;;  %v1208_v22 = vld [vmem:[#allocation5 + $0x2c] sm:$0xf]  ;;  %v1410_v24 = vmov 0   ;;  %v1526_v32 = vor.u32 %v1207_v13, %v1069_v14 }
  0x1f   :  { %251 = vmatpush.bf16.msra.mxu0 %v1488_v56  ;;  %v1077_v23 = vld [vmem:[#allocation5 + $0x38] sm:$0xf0]  ;;  %1243 = vset.pattern.permute.xlu0 %v1410_v24  ;;  %vm322_vm0 = vcmp.gt.f32.partialorder %v321_v20, 0.0  ;;  %v1191_v26 = vld [vmem:[%s1899_s2 + $0x10] sm:$0xff]  ;;  %v1051_v28 = vld [vmem:[#allocation5] sm:$0xf]  ;;  %v1528_v35 = vor.u32 %v1210_v19, %v1075_v18 }
  0x20   :  { %264 = vmatpush.bf16.msra.mxu1 %v1492_v57  ;;  %1244 = vset.pattern.permute.xlu1 %v1410_v24  ;;  %v1205_v30 = vld [vmem:[#allocation5 + $0xc] sm:$0xf0]  ;;  %v323_v31 = vsel %vm322_vm0, 1, %v1410_v24  ;;  %vm519_vm1 = vcmp.gt.f32.partialorder %v1191_v26, 0.0  ;;  %v1203_v36 = vld [vmem:[#allocation5 + $0x4] sm:$0xf]  ;;  %v1535_v41 = vor.u32 %v1208_v22, %v1077_v23 }
  0x21   :  { %277 = vmatpush.bf16.msra.mxu2 %v1494_v58  ;;  %290 = vmatpush.bf16.msra.mxu3 %v1497_v62  ;;  %v1053_v37 = vld [vmem:[#allocation5 + $0x10] sm:$0xf0]  ;;  %v1189_v39 = vld [vmem:[%s1899_s2 + $0x8] sm:$0xff]  ;;  %v520_v40 = vsel %vm519_vm1, 1, %v1410_v24  ;;  %v1206_v43 = vld [vmem:[#allocation5 + $0x14] sm:$0xf0]  ;;  %v1541_v51 = vor.u32 %v1205_v30, %v1051_v28 }
  0x22   :  { %1245 = vset.pattern.permute.xlu2 %v1410_v24  ;;  %v1059_v42 = vld [vmem:[#allocation5 + $0x8] sm:$0xf]  ;;  %325 = vperm.xlu0 %1243, %v323_v31   ;;  %v1193_v47 = vld [vmem:[%s1899_s2 + $0x18] sm:$0xff]  ;;  %v1204_v48 = vld [vmem:[#allocation5 + $0xc] sm:$0xf]  ;;  %vm420_vm2 = vcmp.gt.f32.partialorder %v1189_v39, 0.0  ;;  %v1545_v52 = vor.u32 %v1203_v36, %v1053_v37 }
  0x23   :  { %252 = vmatpush.bf16.msra.mxu0 %v1500_v5  ;;  %v1061_v49 = vld [vmem:[#allocation5 + $0x18] sm:$0xf0]  ;;  %522 = vperm.xlu1 %1244, %v520_v40   ;;  %v1547_v53 = vor.u32 %v1206_v43, %v1059_v42  ;;  %vm618_vm3 = vcmp.gt.f32.partialorder %v1193_v47, 0.0  ;;  %v421_v55 = vsel %vm420_vm2, 1, %v1410_v24  ;;  %v1199_v60 = vld [vmem:[%s1899_s2 + $0x30] sm:$0xff]  ;;  %v330_v61 = vld [vmem:[%s1900_s3] sm:$0xff] }
  0x24   :  { %265 = vmatpush.bf16.msra.mxu1 %v1504_v9  ;;  %v1550_v54 = vor.u32 %v1204_v48, %v1061_v49  ;;  %v619_v59 = vsel %vm618_vm3, 1, %v1410_v24  ;;  %vm915_vm4 = vcmp.gt.f32.partialorder %v1199_v60, 0.0  ;;  %vm331_vm5 = vcmp.gt.f32.partialorder %v330_v61, 0.0  ;;  %v1192_v1 = vld [vmem:[%s1900_s3 + $0x10] sm:$0xff]  ;;  %v1198_v4 = vld [vmem:[%s1900_s3 + $0x28] sm:$0xff]  ;;  %v1202_v11 = vld [vmem:[%s1900_s3 + $0x38] sm:$0xff] }
  0x25   :  { %278 = vmatpush.bf16.msra.mxu2 %v1506_v10  ;;  %291 = vmatpush.bf16.msra.mxu3 %v1509_v15  ;;  %v916_v63 = vsel %vm915_vm4, 1, %v1410_v24  ;;  %v332_v0 = vsel %vm331_vm5, 1, %v1410_v24  ;;  %vm529_vm6 = vcmp.gt.f32.partialorder %v1192_v1, 0.0  ;;  %vm826_vm7 = vcmp.gt.f32.partialorder %v1198_v4, 0.0  ;;  %v83_v14 = vld [vmem:[#allocation2] sm:$0xff]  ;;  %v84_v18 = vld [vmem:[#allocation2 + $0x8] sm:$0xff] }
  0x26   :  { %v530_v2 = vsel %vm529_vm6, 1, %v1410_v24  ;;  %v827_v6 = vsel %vm826_vm7, 1, %v1410_v24  ;;  %vm1023_vm8 = vcmp.gt.f32.partialorder %v1202_v11, 0.0  ;;  %v1195_v23 = vld [vmem:[%s1899_s2 + $0x20] sm:$0xff]  ;;  %v1197_v31 = vld [vmem:[%s1899_s2 + $0x28] sm:$0xff]  ;;  %v85_v37 = vld [vmem:[#allocation2 + $0x10] sm:$0xff] }
  0x27   :  { %253 = vmatpush.bf16.msra.mxu0 %v1520_v27  ;;  %v1024_v13 = vsel %vm1023_vm8, 1, %v1410_v24  ;;  %vm717_vm9 = vcmp.gt.f32.partialorder %v1195_v23, 0.0  ;;  %v86_v39 = vld [vmem:[#allocation2 + $0x18] sm:$0xff]  ;;  %vm816_vm10 = vcmp.gt.f32.partialorder %v1197_v31, 0.0  ;;  %v1190_v61 = vld [vmem:[%s1900_s3 + $0x8] sm:$0xff]  ;;  %s1038_s7 = sshll.u32 %s1901_s4, 4  ;;  %s1039_s7 = int_to_ptr.hbm [resolvable:$true] %s1038_s7 }
  0x28   :  { %266 = vmatpush.bf16.msra.mxu1 %v1526_v32  ;;  %v718_v30 = vsel %vm717_vm9, 1, %v1410_v24  ;;  %vm430_vm11 = vcmp.gt.f32.partialorder %v1190_v61, 0.0 }
  0x29   :  { %279 = vmatpush.bf16.msra.mxu2 %v1528_v35  ;;  %292 = vmatpush.bf16.msra.mxu3 %v1535_v41 }
  0x2a   :  { %423 = vperm.xlu0 %1243, %v421_v55   ;;  %720 = vperm.xlu2 %1245, %v718_v30   ;;  %v817_v55 = vsel %vm816_vm10, 1, %v1410_v24 }
  0x2b   :  { %254 = vmatpush.bf16.msra.mxu0 %v1541_v51  ;;  %621 = vperm.xlu1 %1244, %v619_v59  }
  0x2c   :  { %267 = vmatpush.bf16.msra.mxu1 %v1545_v52 }
  0x2d   :  { %280 = vmatpush.bf16.msra.mxu2 %v1547_v53  ;;  %293 = vmatpush.bf16.msra.mxu3 %v1550_v54 }
  0x2e   :  { %255 = vmatmul.bf16.vlgmr.msra.gmra.mxu0 %v1410_v24 }
  0x2f   :  { %268 = vmatmul.bf16.vlgmr.msra.gmra.mxu1 %v1410_v24  ;;  %344 = vmatpush.bf16.msrb.mxu0 %v1443_v3 }
  0x30   :  { %281 = vmatmul.bf16.vlgmr.msra.gmra.mxu2 %v1410_v24  ;;  %294 = vmatmul.bf16.vlgmr.msra.gmra.mxu3 %v1410_v24 }
  0x31   :  { %357 = vmatpush.bf16.msrb.mxu1 %v1445_v7  ;;  %370 = vmatpush.bf16.msrb.mxu2 %v1447_v8 }
  0x32   :  { %383 = vmatpush.bf16.msrb.mxu3 %v1450_v12  ;;  %918 = vperm.xlu0 %1243, %v916_v63  }
  0x33   :  { %345 = vmatpush.bf16.msrb.mxu0 %v1454_v16  ;;  %334 = vperm.xlu1 %1244, %v332_v0  }
  0x34   :  { %819 = vperm.xlu2 %1245, %v817_v55   ;;  %v1194_v55 = vld [vmem:[%s1900_s3 + $0x18] sm:$0xff] }
  0x35   :  { %358 = vmatpush.bf16.msrb.mxu1 %v1456_v17  ;;  %371 = vmatpush.bf16.msrb.mxu2 %v1459_v21  ;;  %vm628_vm14 = vcmp.gt.f32.partialorder %v1194_v55, 0.0 }
  0x36   :  { %384 = vmatpush.bf16.msrb.mxu3 %v1461_v25  ;;  %v629_v61 = vsel %vm628_vm14, 1, %v1410_v24 }
  0x37   :  { %346 = vmatpush.bf16.msrb.mxu0 %v1464_v29 }
  0x39   :  { %359 = vmatpush.bf16.msrb.mxu1 %v1468_v33  ;;  %372 = vmatpush.bf16.msrb.mxu2 %v1470_v34 }
  0x3a   :  { %385 = vmatpush.bf16.msrb.mxu3 %v1473_v38  ;;  %532 = vperm.xlu0 %1243, %v530_v2  }
  0x3b   :  { %347 = vmatpush.bf16.msrb.mxu0 %v1476_v44  ;;  %631 = vperm.xlu1 %1244, %v629_v61  }
  0x3d   :  { %360 = vmatpush.bf16.msrb.mxu1 %v1480_v45  ;;  %373 = vmatpush.bf16.msrb.mxu2 %v1482_v46 }
  0x3e   :  { %386 = vmatpush.bf16.msrb.mxu3 %v1485_v50 }
  0x3f   :  { %348 = vmatpush.bf16.msrb.mxu0 %v1488_v56 }
  0x41   :  { %361 = vmatpush.bf16.msrb.mxu1 %v1492_v57  ;;  %374 = vmatpush.bf16.msrb.mxu2 %v1494_v58 }
  0x42   :  { %387 = vmatpush.bf16.msrb.mxu3 %v1497_v62  ;;  %829 = vperm.xlu0 %1243, %v827_v6  }
  0x43   :  { %349 = vmatpush.bf16.msrb.mxu0 %v1500_v5 }
  0x45   :  { %362 = vmatpush.bf16.msrb.mxu1 %v1504_v9  ;;  %375 = vmatpush.bf16.msrb.mxu2 %v1506_v10 }
  0x46   :  { %388 = vmatpush.bf16.msrb.mxu3 %v1509_v15 }
  0x47   :  { %350 = vmatpush.bf16.msrb.mxu0 %v1520_v27 }
  0x49   :  { %363 = vmatpush.bf16.msrb.mxu1 %v1526_v32  ;;  %376 = vmatpush.bf16.msrb.mxu2 %v1528_v35 }
  0x4a   :  { %389 = vmatpush.bf16.msrb.mxu3 %v1535_v41  ;;  %1026 = vperm.xlu0 %1243, %v1024_v13  }
  0x4b   :  { %351 = vmatpush.bf16.msrb.mxu0 %v1541_v51 }
  0x4d   :  { %364 = vmatpush.bf16.msrb.mxu1 %v1545_v52  ;;  %377 = vmatpush.bf16.msrb.mxu2 %v1547_v53 }
  0x4e   :  { %390 = vmatpush.bf16.msrb.mxu3 %v1550_v54 }
  0x4f   :  { %443 = vmatpush.bf16.msra.mxu0 %v1443_v3 }
  0x51   :  { %456 = vmatpush.bf16.msra.mxu1 %v1445_v7  ;;  %469 = vmatpush.bf16.msra.mxu2 %v1447_v8 }
  0x52   :  { %482 = vmatpush.bf16.msra.mxu3 %v1450_v12 }
  0x53   :  { %444 = vmatpush.bf16.msra.mxu0 %v1454_v16 }
  0x55   :  { %457 = vmatpush.bf16.msra.mxu1 %v1456_v17  ;;  %470 = vmatpush.bf16.msra.mxu2 %v1459_v21 }
  0x56   :  { %483 = vmatpush.bf16.msra.mxu3 %v1461_v25 }
  0x57   :  { %445 = vmatpush.bf16.msra.mxu0 %v1464_v29 }
  0x59   :  { %458 = vmatpush.bf16.msra.mxu1 %v1468_v33  ;;  %471 = vmatpush.bf16.msra.mxu2 %v1470_v34 }
  0x5a   :  { %484 = vmatpush.bf16.msra.mxu3 %v1473_v38 }
  0x5b   :  { %446 = vmatpush.bf16.msra.mxu0 %v1476_v44 }
  0x5d   :  { %459 = vmatpush.bf16.msra.mxu1 %v1480_v45  ;;  %472 = vmatpush.bf16.msra.mxu2 %v1482_v46 }
  0x5e   :  { %485 = vmatpush.bf16.msra.mxu3 %v1485_v50 }
  0x5f   :  { %447 = vmatpush.bf16.msra.mxu0 %v1488_v56 }
  0x61   :  { %460 = vmatpush.bf16.msra.mxu1 %v1492_v57  ;;  %473 = vmatpush.bf16.msra.mxu2 %v1494_v58 }
  0x62   :  { %486 = vmatpush.bf16.msra.mxu3 %v1497_v62 }
  0x63   :  { %448 = vmatpush.bf16.msra.mxu0 %v1500_v5 }
  0x65   :  { %461 = vmatpush.bf16.msra.mxu1 %v1504_v9  ;;  %474 = vmatpush.bf16.msra.mxu2 %v1506_v10 }
  0x66   :  { %487 = vmatpush.bf16.msra.mxu3 %v1509_v15 }
  0x67   :  { %449 = vmatpush.bf16.msra.mxu0 %v1520_v27 }
  0x69   :  { %462 = vmatpush.bf16.msra.mxu1 %v1526_v32  ;;  %475 = vmatpush.bf16.msra.mxu2 %v1528_v35 }
  0x6a   :  { %488 = vmatpush.bf16.msra.mxu3 %v1535_v41 }
  0x6b   :  { %450 = vmatpush.bf16.msra.mxu0 %v1541_v51 }
  0x6d   :  { %463 = vmatpush.bf16.msra.mxu1 %v1545_v52  ;;  %476 = vmatpush.bf16.msra.mxu2 %v1547_v53 }
  0x6e   :  { %489 = vmatpush.bf16.msra.mxu3 %v1550_v54 }
  0xab   :  { %v256_v19 = vpop.f32.mrf.mxu0 }
  0xac   :  { %v299_v20 = vadd.f32 %v256_v19, %v83_v14  ;;  %v269_v22 = vpop.f32.mrf.mxu1  ;;  %v326_v14 = vpop.permute.xlu0 %325 }
  0xad   :  { %v300_v26 = vadd.f32 %v269_v22, %v84_v18  ;;  %vm327_vm12 = vcmp.eq.s32.totalorder %v326_v14, 1 }
  0xae   :  { %v303_v28 = vmul.f32 0.5, %v299_v20  ;;  %v431_v20 = vsel %vm430_vm11, 1, %v1410_v24  ;;  %vm1177_vm13 = vmpackc.low %vm327_vm12, %vm327_vm12 }
  0xaf   :  { %v307_v36 = vmul.f32 0.5, %v300_v26  ;;  %433 = vperm.xlu2 %1245, %v431_v20  }
  0xb0   :  { %1246 = vtanh.f32 %v303_v28 }
  0xb1   :  { %1248 = vtanh.f32 %v307_v36 }
  0xb3   :  { %v282_v40 = vpop.f32.mrf.mxu2  ;;  %v295_v43 = vpop.f32.mrf.mxu3 }
  0xb4   :  { %v301_v42 = vadd.f32 %v282_v40, %v85_v37  ;;  %v258_v47 = vpop.f32.mrf.mxu0  ;;  %v302_v48 = vadd.f32 %v295_v43, %v86_v39  ;;  %v271_v49 = vpop.f32.mrf.mxu1  ;;  %v339_v40 = vld [vmem:[#allocation2 + $0x20] sm:$0xff] }
  0xb6   :  { %1250 = vtanh.f32 %v301_v42  ;;  %v1247_v59 = vpop.eup %1246  ;;  %v312_v60 = vmul.f32 0.5, %v302_v48  ;;  %v340_v42 = vld [vmem:[#allocation2 + $0x28] sm:$0xff] }
  0xb7   :  { %v1249_v63 = vpop.eup %1248  ;;  %v305_v0 = vadd.f32 1.0, %v1247_v59 }
  0xb8   :  { %v309_v1 = vadd.f32 1.0, %v1249_v63  ;;  %1252 = vtanh.f32 %v312_v60  ;;  %v1200_v63 = vld [vmem:[%s1900_s3 + $0x30] sm:$0xff] }
  0xb9   :  { %v306_v2 = vmul.f32 0.5, %v305_v0  ;;  %v341_v0 = vld [vmem:[#allocation2 + $0x30] sm:$0xff]  ;;  %vm925_vm15 = vcmp.gt.f32.partialorder %v1200_v63, 0.0 }
  0xba   :  { %v310_v4 = vmul.f32 0.5, %v309_v1  ;;  %v342_v1 = vld [vmem:[#allocation2 + $0x38] sm:$0xff] }
  0xbb   :  { %v284_v6 = vpop.f32.mrf.mxu2  ;;  %v297_v13 = vpop.f32.mrf.mxu3 }
  0xbc   :  { %v1251_v11 = vpop.eup %1250  ;;  %v316_v18 = vmul.f32 0.0, %v310_v4 }
  0xbd   :  { %v317_v19 = vmul.f32 %v1251_v11, %v306_v2 }
  0xbe   :  { %v1253_v22 = vpop.eup %1252 }
  0xbf   :  { %v318_v23 = vadd.f32 %v317_v19, %v316_v18  ;;  %v314_v26 = vadd.f32 1.0, %v1253_v22  ;;  %v926_v19 = vsel %vm925_vm15, 1, %v1410_v24 }
  0xc0   :  { %928 = vperm.xlu1 %1244, %v926_v19   ;;  %v440_v19 = vld [vmem:[#allocation2 + $0x50] sm:$0xff] }
  0xc1   :  { %1254 = vtanh.f32 %v318_v23  ;;  %v1658_v28 = vsel %vm327_vm12, %v318_v23, 0.0  ;;  %v315_v30 = vmul.f32 0.5, %v314_v26 }
  0xc7   :  { %v1255_v31 = vpop.eup %1254 }
  0xc8   :  { %v320_v36 = vmul.f32 %v1255_v31, %v315_v30 }
  0xca   :  { %v1660_v37 = vsel %vm327_vm12, %v320_v36, 0.0  ;;  %v1178_v39 = vpack.c.bf16 %v320_v36, %v320_v36 }
  0xcc   :  { %1179 = vmatmul.msk.bf16.vlgmr.msrb.gmra.mxu0 %vm1177_vm13, %v1178_v39  ;;  %1182 = vmatmul.msk.bf16.vlgmr.msrb.gmra.mxu1 %vm1177_vm13, %v1178_v39 }
  0xcd   :  { %1185 = vmatmul.msk.bf16.vlgmr.msrb.gmra.mxu2 %vm1177_vm13, %v1178_v39  ;;  %1188 = vmatmul.msk.bf16.vlgmr.msrb.gmra.mxu3 %vm1177_vm13, %v1178_v39 }
  0xce   :  { %542 = vmatpush.bf16.msrb.mxu0 %v1443_v3  ;;  %555 = vmatpush.bf16.msrb.mxu1 %v1445_v7 }
  0xcf   :  { %568 = vmatpush.bf16.msrb.mxu2 %v1447_v8  ;;  %581 = vmatpush.bf16.msrb.mxu3 %v1450_v12 }
  0xd2   :  { %543 = vmatpush.bf16.msrb.mxu0 %v1454_v16  ;;  %556 = vmatpush.bf16.msrb.mxu1 %v1456_v17 }
  0xd3   :  { %569 = vmatpush.bf16.msrb.mxu2 %v1459_v21  ;;  %582 = vmatpush.bf16.msrb.mxu3 %v1461_v25 }
  0xd6   :  { %544 = vmatpush.bf16.msrb.mxu0 %v1464_v29  ;;  %557 = vmatpush.bf16.msrb.mxu1 %v1468_v33 }
  0xd7   :  { %570 = vmatpush.bf16.msrb.mxu2 %v1470_v34  ;;  %583 = vmatpush.bf16.msrb.mxu3 %v1473_v38 }
  0xda   :  { %545 = vmatpush.bf16.msrb.mxu0 %v1476_v44  ;;  %558 = vmatpush.bf16.msrb.mxu1 %v1480_v45 }
  0xdb   :  { %571 = vmatpush.bf16.msrb.mxu2 %v1482_v46  ;;  %584 = vmatpush.bf16.msrb.mxu3 %v1485_v50 }
  0xde   :  { %546 = vmatpush.bf16.msrb.mxu0 %v1488_v56  ;;  %559 = vmatpush.bf16.msrb.mxu1 %v1492_v57 }
  0xdf   :  { %572 = vmatpush.bf16.msrb.mxu2 %v1494_v58  ;;  %585 = vmatpush.bf16.msrb.mxu3 %v1497_v62 }
  0xe2   :  { %547 = vmatpush.bf16.msrb.mxu0 %v1500_v5  ;;  %560 = vmatpush.bf16.msrb.mxu1 %v1504_v9 }
  0xe3   :  { %573 = vmatpush.bf16.msrb.mxu2 %v1506_v10  ;;  %586 = vmatpush.bf16.msrb.mxu3 %v1509_v15 }
  0xe6   :  { %548 = vmatpush.bf16.msrb.mxu0 %v1520_v27  ;;  %561 = vmatpush.bf16.msrb.mxu1 %v1526_v32 }
  0xe7   :  { %574 = vmatpush.bf16.msrb.mxu2 %v1528_v35  ;;  %587 = vmatpush.bf16.msrb.mxu3 %v1535_v41 }
  0xea   :  { %549 = vmatpush.bf16.msrb.mxu0 %v1541_v51  ;;  %562 = vmatpush.bf16.msrb.mxu1 %v1545_v52 }
  0xeb   :  { %575 = vmatpush.bf16.msrb.mxu2 %v1547_v53  ;;  %588 = vmatpush.bf16.msrb.mxu3 %v1550_v54 }
 0x149   :  { %v353_v43 = vpop.f32.mrf.mxu0  ;;  %v366_v47 = vpop.f32.mrf.mxu1 }
 0x14a   :  { %v396_v48 = vadd.f32 %v353_v43, %v339_v40  ;;  %v397_v49 = vadd.f32 %v366_v47, %v340_v42 }
 0x14c   :  { %v400_v59 = vmul.f32 0.5, %v396_v48  ;;  %v404_v60 = vmul.f32 0.5, %v397_v49  ;;  %v424_v48 = vpop.permute.xlu0 %423 }
 0x14d   :  { %vm425_vm0 = vcmp.eq.s32.totalorder %v424_v48, 1 }
 0x14e   :  { %1256 = vtanh.f32 %v400_v59 }
 0x14f   :  { %1258 = vtanh.f32 %v404_v60 }
 0x150   :  { %v379_v2 = vpop.f32.mrf.mxu2  ;;  %v392_v4 = vpop.f32.mrf.mxu3 }
 0x151   :  { %v398_v6 = vadd.f32 %v379_v2, %v341_v0  ;;  %v399_v11 = vadd.f32 %v392_v4, %v342_v1  ;;  %v355_v13 = vpop.f32.mrf.mxu0  ;;  %v368_v14 = vpop.f32.mrf.mxu1  ;;  %v439_v2 = vld [vmem:[#allocation2 + $0x48] sm:$0xff] }
 0x153   :  { %1260 = vtanh.f32 %v398_v6  ;;  %v409_v18 = vmul.f32 0.5, %v399_v11 }
 0x154   :  { %v1257_v20 = vpop.eup %1256 }
 0x155   :  { %v1259_v22 = vpop.eup %1258  ;;  %v402_v23 = vadd.f32 1.0, %v1257_v20  ;;  %1262 = vtanh.f32 %v409_v18  ;;  %v441_v20 = vld [vmem:[#allocation2 + $0x58] sm:$0xff] }
 0x156   :  { %v406_v26 = vadd.f32 1.0, %v1259_v22 }
 0x157   :  { %v403_v30 = vmul.f32 0.5, %v402_v23 }
 0x158   :  { %v407_v31 = vmul.f32 0.5, %v406_v26  ;;  %v381_v36 = vpop.f32.mrf.mxu2  ;;  %v394_v39 = vpop.f32.mrf.mxu3 }
 0x159   :  { %v1261_v40 = vpop.eup %1260 }
 0x15a   :  { %v413_v42 = vmul.f32 %v407_v31, %v1658_v28  ;;  %v414_v43 = vmul.f32 %v1261_v40, %v403_v30 }
 0x15b   :  { %v1263_v47 = vpop.eup %1262 }
 0x15c   :  { %v415_v49 = vadd.f32 %v414_v43, %v413_v42  ;;  %v411_v59 = vadd.f32 1.0, %v1263_v47 }
 0x15e   :  { %1264 = vtanh.f32 %v415_v49  ;;  %v1704_v55 = vsel %vm425_vm0, %v415_v49, %v1658_v28  ;;  %v412_v60 = vmul.f32 0.5, %v411_v59  ;;  %v438_v28 = vld [vmem:[#allocation2 + $0x40] sm:$0xff] }
 0x164   :  { %v1265_v61 = vpop.eup %1264 }
 0x165   :  { %v417_v63 = vmul.f32 %v1265_v61, %v412_v60 }
 0x167   :  { %v1707_v0 = vsel %vm425_vm0, %v417_v63, %v1660_v37  ;;  %v523_v63 = vpop.permute.xlu1 %522 }
 0x168   :  { %v442_v1 = vpack.c.bf16 %v1707_v0, %v1707_v0  ;;  %vm524_vm1 = vcmp.eq.s32.totalorder %v523_v63, 1 }
 0x16a   :  { %451 = vmatmul.bf16.vlgmr.msra.gmra.mxu0 %v442_v1  ;;  %464 = vmatmul.bf16.vlgmr.msra.gmra.mxu1 %v442_v1 }
 0x16b   :  { %477 = vmatmul.bf16.vlgmr.msra.gmra.mxu2 %v442_v1  ;;  %490 = vmatmul.bf16.vlgmr.msra.gmra.mxu3 %v442_v1 }
 0x16c   :  { %641 = vmatpush.bf16.msra.mxu0 %v1443_v3  ;;  %654 = vmatpush.bf16.msra.mxu1 %v1445_v7 }
 0x16d   :  { %667 = vmatpush.bf16.msra.mxu2 %v1447_v8  ;;  %680 = vmatpush.bf16.msra.mxu3 %v1450_v12 }
 0x170   :  { %642 = vmatpush.bf16.msra.mxu0 %v1454_v16  ;;  %655 = vmatpush.bf16.msra.mxu1 %v1456_v17 }
 0x171   :  { %668 = vmatpush.bf16.msra.mxu2 %v1459_v21  ;;  %681 = vmatpush.bf16.msra.mxu3 %v1461_v25 }
 0x174   :  { %643 = vmatpush.bf16.msra.mxu0 %v1464_v29  ;;  %656 = vmatpush.bf16.msra.mxu1 %v1468_v33 }
 0x175   :  { %669 = vmatpush.bf16.msra.mxu2 %v1470_v34  ;;  %682 = vmatpush.bf16.msra.mxu3 %v1473_v38 }
 0x178   :  { %644 = vmatpush.bf16.msra.mxu0 %v1476_v44  ;;  %657 = vmatpush.bf16.msra.mxu1 %v1480_v45 }
 0x179   :  { %670 = vmatpush.bf16.msra.mxu2 %v1482_v46  ;;  %683 = vmatpush.bf16.msra.mxu3 %v1485_v50 }
 0x17c   :  { %645 = vmatpush.bf16.msra.mxu0 %v1488_v56  ;;  %658 = vmatpush.bf16.msra.mxu1 %v1492_v57 }
 0x17d   :  { %671 = vmatpush.bf16.msra.mxu2 %v1494_v58  ;;  %684 = vmatpush.bf16.msra.mxu3 %v1497_v62 }
 0x180   :  { %646 = vmatpush.bf16.msra.mxu0 %v1500_v5  ;;  %659 = vmatpush.bf16.msra.mxu1 %v1504_v9 }
 0x181   :  { %672 = vmatpush.bf16.msra.mxu2 %v1506_v10  ;;  %685 = vmatpush.bf16.msra.mxu3 %v1509_v15 }
 0x184   :  { %647 = vmatpush.bf16.msra.mxu0 %v1520_v27  ;;  %660 = vmatpush.bf16.msra.mxu1 %v1526_v32 }
 0x185   :  { %673 = vmatpush.bf16.msra.mxu2 %v1528_v35  ;;  %686 = vmatpush.bf16.msra.mxu3 %v1535_v41 }
 0x188   :  { %648 = vmatpush.bf16.msra.mxu0 %v1541_v51  ;;  %661 = vmatpush.bf16.msra.mxu1 %v1545_v52 }
 0x189   :  { %674 = vmatpush.bf16.msra.mxu2 %v1547_v53  ;;  %687 = vmatpush.bf16.msra.mxu3 %v1550_v54 }
 0x1e7   :  { %v452_v4 = vpop.f32.mrf.mxu0  ;;  %v465_v6 = vpop.f32.mrf.mxu1 }
 0x1e8   :  { %v495_v11 = vadd.f32 %v452_v4, %v438_v28  ;;  %v496_v13 = vadd.f32 %v465_v6, %v439_v2 }
 0x1ea   :  { %v499_v14 = vmul.f32 0.5, %v495_v11  ;;  %v503_v18 = vmul.f32 0.5, %v496_v13 }
 0x1ec   :  { %1266 = vtanh.f32 %v499_v14 }
 0x1ed   :  { %1268 = vtanh.f32 %v503_v18 }
 0x1ee   :  { %v478_v22 = vpop.f32.mrf.mxu2  ;;  %v491_v23 = vpop.f32.mrf.mxu3 }
 0x1ef   :  { %v497_v26 = vadd.f32 %v478_v22, %v440_v19  ;;  %v498_v30 = vadd.f32 %v491_v23, %v441_v20  ;;  %v454_v31 = vpop.f32.mrf.mxu0  ;;  %v467_v36 = vpop.f32.mrf.mxu1  ;;  %v538_v22 = vld [vmem:[#allocation2 + $0x68] sm:$0xff] }
 0x1f0   :  { %v1196_v36 = vld [vmem:[%s1900_s3 + $0x20] sm:$0xff] }
 0x1f1   :  { %1270 = vtanh.f32 %v497_v26  ;;  %v508_v39 = vmul.f32 0.5, %v498_v30  ;;  %vm727_vm2 = vcmp.gt.f32.partialorder %v1196_v36, 0.0  ;;  %v622_v36 = vpop.permute.xlu1 %621 }
 0x1f2   :  { %v1267_v40 = vpop.eup %1266  ;;  %vm623_vm4 = vcmp.eq.s32.totalorder %v622_v36, 1 }
 0x1f3   :  { %v1269_v42 = vpop.eup %1268  ;;  %v501_v43 = vadd.f32 1.0, %v1267_v40  ;;  %1272 = vtanh.f32 %v508_v39 }
 0x1f4   :  { %v505_v47 = vadd.f32 1.0, %v1269_v42  ;;  %v728_v42 = vsel %vm727_vm2, 1, %v1410_v24 }
 0x1f5   :  { %v502_v48 = vmul.f32 0.5, %v501_v43  ;;  %v1201_v43 = vld [vmem:[%s1899_s2 + $0x38] sm:$0xff]  ;;  %730 = vperm.xlu2 %1245, %v728_v42   ;;  %s1411_s2 = smov [#allocation7]  }
 0x1f6   :  { %v506_v49 = vmul.f32 0.5, %v505_v47  ;;  %v480_v59 = vpop.f32.mrf.mxu2  ;;  %v493_v60 = vpop.f32.mrf.mxu3  ;;  %v539_v47 = vld [vmem:[#allocation2 + $0x70] sm:$0xff]  ;;  %vm1014_vm3 = vcmp.gt.f32.partialorder %v1201_v43, 0.0  ;;  %s1036_s3 = sshll.u32 %s1411_s2, 4  ;;  %s1037_s3 = int_to_ptr.vmem [resolvable:$true] %s1036_s3 }
 0x1f7   :  { %v1271_v61 = vpop.eup %1270 }
 0x1f8   :  { %v512_v1 = vmul.f32 %v506_v49, %v1704_v55  ;;  %v513_v28 = vmul.f32 %v1271_v61, %v502_v48  ;;  %v540_v48 = vld [vmem:[#allocation2 + $0x78] sm:$0xff] }
 0x1f9   :  { %v1273_v2 = vpop.eup %1272 }
 0x1fa   :  { %v514_v4 = vadd.f32 %v513_v28, %v512_v1  ;;  %v510_v11 = vadd.f32 1.0, %v1273_v2  ;;  %v1015_v2 = vsel %vm1014_vm3, 1, %v1410_v24 }
 0x1fc   :  { %1274 = vtanh.f32 %v514_v4  ;;  %v1745_v6 = vsel %vm524_vm1, %v514_v4, %v1704_v55  ;;  %v511_v13 = vmul.f32 0.5, %v510_v11  ;;  %v537_v55 = vld [vmem:[#allocation2 + $0x60] sm:$0xff] }
 0x1fd   :  { %1017 = vperm.xlu2 %1245, %v1015_v2  }
 0x202   :  { %v1275_v14 = vpop.eup %1274 }
 0x203   :  { %v516_v18 = vmul.f32 %v1275_v14, %v511_v13 }
 0x205   :  { %v1748_v19 = vsel %vm524_vm1, %v516_v18, %v1707_v0 }
 0x206   :  { %v541_v20 = vpack.c.bf16 %v1748_v19, %v1748_v19 }
 0x208   :  { %550 = vmatmul.bf16.vlgmr.msrb.gmra.mxu0 %v541_v20  ;;  %563 = vmatmul.bf16.vlgmr.msrb.gmra.mxu1 %v541_v20 }
 0x209   :  { %576 = vmatmul.bf16.vlgmr.msrb.gmra.mxu2 %v541_v20  ;;  %589 = vmatmul.bf16.vlgmr.msrb.gmra.mxu3 %v541_v20 }
 0x20a   :  { %740 = vmatpush.bf16.msrb.mxu0 %v1443_v3  ;;  %753 = vmatpush.bf16.msrb.mxu1 %v1445_v7 }
 0x20b   :  { %766 = vmatpush.bf16.msrb.mxu2 %v1447_v8  ;;  %779 = vmatpush.bf16.msrb.mxu3 %v1450_v12 }
 0x20e   :  { %741 = vmatpush.bf16.msrb.mxu0 %v1454_v16  ;;  %754 = vmatpush.bf16.msrb.mxu1 %v1456_v17 }
 0x20f   :  { %767 = vmatpush.bf16.msrb.mxu2 %v1459_v21  ;;  %780 = vmatpush.bf16.msrb.mxu3 %v1461_v25 }
 0x212   :  { %742 = vmatpush.bf16.msrb.mxu0 %v1464_v29  ;;  %755 = vmatpush.bf16.msrb.mxu1 %v1468_v33 }
 0x213   :  { %768 = vmatpush.bf16.msrb.mxu2 %v1470_v34  ;;  %781 = vmatpush.bf16.msrb.mxu3 %v1473_v38 }
 0x216   :  { %743 = vmatpush.bf16.msrb.mxu0 %v1476_v44  ;;  %756 = vmatpush.bf16.msrb.mxu1 %v1480_v45 }
 0x217   :  { %769 = vmatpush.bf16.msrb.mxu2 %v1482_v46  ;;  %782 = vmatpush.bf16.msrb.mxu3 %v1485_v50 }
 0x21a   :  { %744 = vmatpush.bf16.msrb.mxu0 %v1488_v56  ;;  %757 = vmatpush.bf16.msrb.mxu1 %v1492_v57 }
 0x21b   :  { %770 = vmatpush.bf16.msrb.mxu2 %v1494_v58  ;;  %783 = vmatpush.bf16.msrb.mxu3 %v1497_v62 }
 0x21e   :  { %745 = vmatpush.bf16.msrb.mxu0 %v1500_v5  ;;  %758 = vmatpush.bf16.msrb.mxu1 %v1504_v9 }
 0x21f   :  { %771 = vmatpush.bf16.msrb.mxu2 %v1506_v10  ;;  %784 = vmatpush.bf16.msrb.mxu3 %v1509_v15 }
 0x222   :  { %746 = vmatpush.bf16.msrb.mxu0 %v1520_v27  ;;  %759 = vmatpush.bf16.msrb.mxu1 %v1526_v32 }
 0x223   :  { %772 = vmatpush.bf16.msrb.mxu2 %v1528_v35  ;;  %785 = vmatpush.bf16.msrb.mxu3 %v1535_v41 }
 0x226   :  { %747 = vmatpush.bf16.msrb.mxu0 %v1541_v51  ;;  %760 = vmatpush.bf16.msrb.mxu1 %v1545_v52 }
 0x227   :  { %773 = vmatpush.bf16.msrb.mxu2 %v1547_v53  ;;  %786 = vmatpush.bf16.msrb.mxu3 %v1550_v54 }
 0x285   :  { %v551_v23 = vpop.f32.mrf.mxu0  ;;  %v564_v26 = vpop.f32.mrf.mxu1 }
 0x286   :  { %v594_v30 = vadd.f32 %v551_v23, %v537_v55  ;;  %v595_v31 = vadd.f32 %v564_v26, %v538_v22 }
 0x288   :  { %v598_v39 = vmul.f32 0.5, %v594_v30  ;;  %v602_v40 = vmul.f32 0.5, %v595_v31 }
 0x28a   :  { %1276 = vtanh.f32 %v598_v39 }
 0x28b   :  { %1278 = vtanh.f32 %v602_v40 }
 0x28c   :  { %v577_v49 = vpop.f32.mrf.mxu2  ;;  %v590_v59 = vpop.f32.mrf.mxu3 }
 0x28d   :  { %v596_v60 = vadd.f32 %v577_v49, %v539_v47  ;;  %v597_v61 = vadd.f32 %v590_v59, %v540_v48  ;;  %v553_v63 = vpop.f32.mrf.mxu0  ;;  %v566_v1 = vpop.f32.mrf.mxu1  ;;  %v637_v59 = vld [vmem:[#allocation2 + $0x88] sm:$0xff] }
 0x28f   :  { %1280 = vtanh.f32 %v596_v60  ;;  %v607_v28 = vmul.f32 0.5, %v597_v61 }
 0x290   :  { %v1277_v4 = vpop.eup %1276 }
 0x291   :  { %v1279_v11 = vpop.eup %1278  ;;  %v600_v13 = vadd.f32 1.0, %v1277_v4  ;;  %1282 = vtanh.f32 %v607_v28  ;;  %v638_v4 = vld [vmem:[#allocation2 + $0x90] sm:$0xff] }
 0x292   :  { %v604_v14 = vadd.f32 1.0, %v1279_v11  ;;  %v639_v11 = vld [vmem:[#allocation2 + $0x98] sm:$0xff] }
 0x293   :  { %v601_v18 = vmul.f32 0.5, %v600_v13 }
 0x294   :  { %v605_v20 = vmul.f32 0.5, %v604_v14  ;;  %v579_v55 = vpop.f32.mrf.mxu2  ;;  %v592_v22 = vpop.f32.mrf.mxu3 }
 0x295   :  { %v1281_v23 = vpop.eup %1280 }
 0x296   :  { %v611_v26 = vmul.f32 %v605_v20, %v1745_v6  ;;  %v612_v30 = vmul.f32 %v1281_v23, %v601_v18 }
 0x297   :  { %v1283_v31 = vpop.eup %1282 }
 0x298   :  { %v613_v39 = vadd.f32 %v612_v30, %v611_v26  ;;  %v609_v40 = vadd.f32 1.0, %v1283_v31 }
 0x29a   :  { %1284 = vtanh.f32 %v613_v39  ;;  %v1794_v24 = vsel %vm623_vm4, %v613_v39, %v1745_v6  ;;  %v610_v42 = vmul.f32 0.5, %v609_v40  ;;  %v636_v6 = vld [vmem:[#allocation2 + $0x80] sm:$0xff] }
 0x2a0   :  { %v1285_v43 = vpop.eup %1284 }
 0x2a1   :  { %v615_v47 = vmul.f32 %v1285_v43, %v610_v42 }
 0x2a3   :  { %v1797_v48 = vsel %vm623_vm4, %v615_v47, %v1748_v19 }
 0x2a4   :  { %v640_v49 = vpack.c.bf16 %v1797_v48, %v1797_v48 }
 0x2a6   :  { %649 = vmatmul.bf16.vlgmr.msra.gmra.mxu0 %v640_v49  ;;  %662 = vmatmul.bf16.vlgmr.msra.gmra.mxu1 %v640_v49 }
 0x2a7   :  { %675 = vmatmul.bf16.vlgmr.msra.gmra.mxu2 %v640_v49  ;;  %688 = vmatmul.bf16.vlgmr.msra.gmra.mxu3 %v640_v49  ;;  %v721_v49 = vpop.permute.xlu2 %720 }
 0x2a8   :  { %839 = vmatpush.bf16.msra.mxu0 %v1443_v3  ;;  %852 = vmatpush.bf16.msra.mxu1 %v1445_v7  ;;  %vm722_vm5 = vcmp.eq.s32.totalorder %v721_v49, 1 }
 0x2a9   :  { %865 = vmatpush.bf16.msra.mxu2 %v1447_v8  ;;  %878 = vmatpush.bf16.msra.mxu3 %v1450_v12 }
 0x2ac   :  { %840 = vmatpush.bf16.msra.mxu0 %v1454_v16  ;;  %853 = vmatpush.bf16.msra.mxu1 %v1456_v17 }
 0x2ad   :  { %866 = vmatpush.bf16.msra.mxu2 %v1459_v21  ;;  %879 = vmatpush.bf16.msra.mxu3 %v1461_v25 }
 0x2b0   :  { %841 = vmatpush.bf16.msra.mxu0 %v1464_v29  ;;  %854 = vmatpush.bf16.msra.mxu1 %v1468_v33 }
 0x2b1   :  { %867 = vmatpush.bf16.msra.mxu2 %v1470_v34  ;;  %880 = vmatpush.bf16.msra.mxu3 %v1473_v38 }
 0x2b4   :  { %842 = vmatpush.bf16.msra.mxu0 %v1476_v44  ;;  %855 = vmatpush.bf16.msra.mxu1 %v1480_v45 }
 0x2b5   :  { %868 = vmatpush.bf16.msra.mxu2 %v1482_v46  ;;  %881 = vmatpush.bf16.msra.mxu3 %v1485_v50 }
 0x2b8   :  { %843 = vmatpush.bf16.msra.mxu0 %v1488_v56  ;;  %856 = vmatpush.bf16.msra.mxu1 %v1492_v57 }
 0x2b9   :  { %869 = vmatpush.bf16.msra.mxu2 %v1494_v58  ;;  %882 = vmatpush.bf16.msra.mxu3 %v1497_v62 }
 0x2bc   :  { %844 = vmatpush.bf16.msra.mxu0 %v1500_v5  ;;  %857 = vmatpush.bf16.msra.mxu1 %v1504_v9 }
 0x2bd   :  { %870 = vmatpush.bf16.msra.mxu2 %v1506_v10  ;;  %883 = vmatpush.bf16.msra.mxu3 %v1509_v15 }
 0x2c0   :  { %845 = vmatpush.bf16.msra.mxu0 %v1520_v27  ;;  %858 = vmatpush.bf16.msra.mxu1 %v1526_v32 }
 0x2c1   :  { %871 = vmatpush.bf16.msra.mxu2 %v1528_v35  ;;  %884 = vmatpush.bf16.msra.mxu3 %v1535_v41 }
 0x2c4   :  { %846 = vmatpush.bf16.msra.mxu0 %v1541_v51  ;;  %859 = vmatpush.bf16.msra.mxu1 %v1545_v52 }
 0x2c5   :  { %872 = vmatpush.bf16.msra.mxu2 %v1547_v53  ;;  %885 = vmatpush.bf16.msra.mxu3 %v1550_v54 }
 0x323   :  { %v650_v60 = vpop.f32.mrf.mxu0  ;;  %v663_v61 = vpop.f32.mrf.mxu1 }
 0x324   :  { %v693_v63 = vadd.f32 %v650_v60, %v636_v6  ;;  %v694_v1 = vadd.f32 %v663_v61, %v637_v59 }
 0x326   :  { %v697_v28 = vmul.f32 0.5, %v693_v63  ;;  %v701_v2 = vmul.f32 0.5, %v694_v1 }
 0x328   :  { %1286 = vtanh.f32 %v697_v28 }
 0x329   :  { %1288 = vtanh.f32 %v701_v2 }
 0x32a   :  { %v676_v13 = vpop.f32.mrf.mxu2  ;;  %v689_v14 = vpop.f32.mrf.mxu3 }
 0x32b   :  { %v695_v18 = vadd.f32 %v676_v13, %v638_v4  ;;  %v696_v20 = vadd.f32 %v689_v14, %v639_v11  ;;  %v652_v55 = vpop.f32.mrf.mxu0  ;;  %v665_v22 = vpop.f32.mrf.mxu1 }
 0x32d   :  { %1290 = vtanh.f32 %v695_v18  ;;  %v706_v23 = vmul.f32 0.5, %v696_v20 }
 0x32e   :  { %v1287_v26 = vpop.eup %1286 }
 0x32f   :  { %v1289_v30 = vpop.eup %1288  ;;  %v699_v31 = vadd.f32 1.0, %v1287_v26  ;;  %1292 = vtanh.f32 %v706_v23  ;;  %v834_v23 = vld [vmem:[#allocation2 + $0xc0] sm:$0xff]  ;;  %v835_v26 = vld [vmem:[#allocation2 + $0xc8] sm:$0xff] }
 0x330   :  { %v703_v36 = vadd.f32 1.0, %v1289_v30 }
 0x331   :  { %v700_v39 = vmul.f32 0.5, %v699_v31 }
 0x332   :  { %v704_v40 = vmul.f32 0.5, %v703_v36  ;;  %v678_v42 = vpop.f32.mrf.mxu2  ;;  %v691_v43 = vpop.f32.mrf.mxu3 }
 0x333   :  { %v1291_v47 = vpop.eup %1290  ;;  %v836_v43 = vld [vmem:[#allocation2 + $0xd0] sm:$0xff] }
 0x334   :  { %v710_v6 = vmul.f32 %v704_v40, %v1794_v24  ;;  %v711_v59 = vmul.f32 %v1291_v47, %v700_v39  ;;  %v837_v47 = vld [vmem:[#allocation2 + $0xd8] sm:$0xff] }
 0x335   :  { %v1293_v60 = vpop.eup %1292 }
 0x336   :  { %v712_v61 = vadd.f32 %v711_v59, %v710_v6  ;;  %v708_v1 = vadd.f32 1.0, %v1293_v60 }
 0x338   :  { %1294 = vtanh.f32 %v712_v61  ;;  %v1835_v63 = vsel %vm722_vm5, %v712_v61, %v1794_v24  ;;  %v709_v28 = vmul.f32 0.5, %v708_v1 }
 0x33e   :  { %v1295_v2 = vpop.eup %1294 }
 0x33f   :  { %v714_v4 = vmul.f32 %v1295_v2, %v709_v28 }
 0x341   :  { %v1838_v11 = vsel %vm722_vm5, %v714_v4, %v1797_v48 }
 0x342   :  { %v739_v13 = vpack.c.bf16 %v1838_v11, %v1838_v11 }
 0x344   :  { %748 = vmatmul.bf16.vlgmr.msrb.gmra.mxu0 %v739_v13  ;;  %761 = vmatmul.bf16.vlgmr.msrb.gmra.mxu1 %v739_v13 }
 0x345   :  { %774 = vmatmul.bf16.vlgmr.msrb.gmra.mxu2 %v739_v13  ;;  %787 = vmatmul.bf16.vlgmr.msrb.gmra.mxu3 %v739_v13 }
 0x346   :  { %938 = vmatpush.bf16.msrb.mxu0 %v1443_v3  ;;  %951 = vmatpush.bf16.msrb.mxu1 %v1445_v7  ;;  %v735_v3 = vld [vmem:[#allocation2 + $0xa0] sm:$0xff]  ;;  %v736_v7 = vld [vmem:[#allocation2 + $0xa8] sm:$0xff] }
 0x347   :  { %964 = vmatpush.bf16.msrb.mxu2 %v1447_v8  ;;  %977 = vmatpush.bf16.msrb.mxu3 %v1450_v12 }
 0x34a   :  { %939 = vmatpush.bf16.msrb.mxu0 %v1454_v16  ;;  %952 = vmatpush.bf16.msrb.mxu1 %v1456_v17 }
 0x34b   :  { %965 = vmatpush.bf16.msrb.mxu2 %v1459_v21  ;;  %978 = vmatpush.bf16.msrb.mxu3 %v1461_v25 }
 0x34e   :  { %940 = vmatpush.bf16.msrb.mxu0 %v1464_v29  ;;  %953 = vmatpush.bf16.msrb.mxu1 %v1468_v33  ;;  %v737_v29 = vld [vmem:[#allocation2 + $0xb0] sm:$0xff]  ;;  %v738_v33 = vld [vmem:[#allocation2 + $0xb8] sm:$0xff] }
 0x34f   :  { %966 = vmatpush.bf16.msrb.mxu2 %v1470_v34  ;;  %979 = vmatpush.bf16.msrb.mxu3 %v1473_v38 }
 0x352   :  { %941 = vmatpush.bf16.msrb.mxu0 %v1476_v44  ;;  %954 = vmatpush.bf16.msrb.mxu1 %v1480_v45 }
 0x353   :  { %967 = vmatpush.bf16.msrb.mxu2 %v1482_v46  ;;  %980 = vmatpush.bf16.msrb.mxu3 %v1485_v50 }
 0x356   :  { %942 = vmatpush.bf16.msrb.mxu0 %v1488_v56  ;;  %955 = vmatpush.bf16.msrb.mxu1 %v1492_v57 }
 0x357   :  { %968 = vmatpush.bf16.msrb.mxu2 %v1494_v58  ;;  %981 = vmatpush.bf16.msrb.mxu3 %v1497_v62 }
 0x35a   :  { %943 = vmatpush.bf16.msrb.mxu0 %v1500_v5  ;;  %956 = vmatpush.bf16.msrb.mxu1 %v1504_v9 }
 0x35b   :  { %969 = vmatpush.bf16.msrb.mxu2 %v1506_v10  ;;  %982 = vmatpush.bf16.msrb.mxu3 %v1509_v15 }
 0x35e   :  { %944 = vmatpush.bf16.msrb.mxu0 %v1520_v27  ;;  %957 = vmatpush.bf16.msrb.mxu1 %v1526_v32 }
 0x35f   :  { %970 = vmatpush.bf16.msrb.mxu2 %v1528_v35  ;;  %983 = vmatpush.bf16.msrb.mxu3 %v1535_v41 }
 0x362   :  { %945 = vmatpush.bf16.msrb.mxu0 %v1541_v51  ;;  %958 = vmatpush.bf16.msrb.mxu1 %v1545_v52  ;;  %v820_v52 = vpop.permute.xlu2 %819 }
 0x363   :  { %971 = vmatpush.bf16.msrb.mxu2 %v1547_v53  ;;  %984 = vmatpush.bf16.msrb.mxu3 %v1550_v54  ;;  %vm821_vm6 = vcmp.eq.s32.totalorder %v820_v52, 1 }
 0x36a   :  { %v434_v52 = vpop.permute.xlu2 %433 }
 0x36b   :  { %vm435_vm9 = vcmp.eq.s32.totalorder %v434_v52, 1 }
 0x3c1   :  { %v749_v8 = vpop.f32.mrf.mxu0  ;;  %v762_v12 = vpop.f32.mrf.mxu1 }
 0x3c2   :  { %v792_v16 = vadd.f32 %v749_v8, %v735_v3  ;;  %v793_v17 = vadd.f32 %v762_v12, %v736_v7 }
 0x3c4   :  { %v796_v21 = vmul.f32 0.5, %v792_v16  ;;  %v800_v25 = vmul.f32 0.5, %v793_v17 }
 0x3c6   :  { %1296 = vtanh.f32 %v796_v21 }
 0x3c7   :  { %1298 = vtanh.f32 %v800_v25 }
 0x3c8   :  { %v775_v34 = vpop.f32.mrf.mxu2  ;;  %v788_v38 = vpop.f32.mrf.mxu3 }
 0x3c9   :  { %v794_v44 = vadd.f32 %v775_v34, %v737_v29  ;;  %v795_v45 = vadd.f32 %v788_v38, %v738_v33  ;;  %v751_v46 = vpop.f32.mrf.mxu0  ;;  %v764_v50 = vpop.f32.mrf.mxu1 }
 0x3ca   :  { %v919_v29 = vpop.permute.xlu0 %918 }
 0x3cb   :  { %1300 = vtanh.f32 %v794_v44  ;;  %v805_v56 = vmul.f32 0.5, %v795_v45  ;;  %vm920_vm7 = vcmp.eq.s32.totalorder %v919_v29, 1 }
 0x3cc   :  { %v1297_v57 = vpop.eup %1296 }
 0x3cd   :  { %v1299_v58 = vpop.eup %1298  ;;  %v798_v62 = vadd.f32 1.0, %v1297_v57  ;;  %1302 = vtanh.f32 %v805_v56  ;;  %v933_v57 = vld [vmem:[#allocation2 + $0xe0] sm:$0xff] }
 0x3ce   :  { %v802_v5 = vadd.f32 1.0, %v1299_v58  ;;  %v934_v58 = vld [vmem:[#allocation2 + $0xe8] sm:$0xff] }
 0x3cf   :  { %v799_v9 = vmul.f32 0.5, %v798_v62 }
 0x3d0   :  { %v803_v10 = vmul.f32 0.5, %v802_v5  ;;  %v777_v15 = vpop.f32.mrf.mxu2  ;;  %v790_v27 = vpop.f32.mrf.mxu3 }
 0x3d1   :  { %v1301_v32 = vpop.eup %1300 }
 0x3d2   :  { %v809_v35 = vmul.f32 %v803_v10, %v1835_v63  ;;  %v810_v41 = vmul.f32 %v1301_v32, %v799_v9  ;;  %v335_v32 = vpop.permute.xlu1 %334 }
 0x3d3   :  { %v1303_v51 = vpop.eup %1302  ;;  %vm336_vm8 = vcmp.eq.s32.totalorder %v335_v32, 1 }
 0x3d4   :  { %v811_v53 = vadd.f32 %v810_v41, %v809_v35  ;;  %v807_v24 = vadd.f32 1.0, %v1303_v51  ;;  %v935_v35 = vld [vmem:[#allocation2 + $0xf0] sm:$0xff]  ;;  %v936_v41 = vld [vmem:[#allocation2 + $0xf8] sm:$0xff]  ;;  %v533_v51 = vpop.permute.xlu0 %532 }
 0x3d5   :  { %vm534_vm10 = vcmp.eq.s32.totalorder %v533_v51, 1 }
 0x3d6   :  { %1304 = vtanh.f32 %v811_v53  ;;  %v823_v54 = vsel %vm821_vm6, %v811_v53, %v1835_v63  ;;  %v808_v14 = vmul.f32 0.5, %v807_v24 }
 0x3dc   :  { %v1305_v18 = vpop.eup %1304 }
 0x3dd   :  { %v813_v20 = vmul.f32 %v1305_v18, %v808_v14 }
 0x3df   :  { %v1877_v55 = vsel %vm821_vm6, %v813_v20, %v1838_v11 }
 0x3e0   :  { %v838_v22 = vpack.c.bf16 %v1877_v55, %v1877_v55 }
 0x3e2   :  { %847 = vmatmul.bf16.vlgmr.msra.gmra.mxu0 %v838_v22  ;;  %860 = vmatmul.bf16.vlgmr.msra.gmra.mxu1 %v838_v22 }
 0x3e3   :  { %873 = vmatmul.bf16.vlgmr.msra.gmra.mxu2 %v838_v22  ;;  %886 = vmatmul.bf16.vlgmr.msra.gmra.mxu3 %v838_v22 }
 0x45f   :  { %v848_v30 = vpop.f32.mrf.mxu0  ;;  %v861_v31 = vpop.f32.mrf.mxu1 }
 0x460   :  { %v891_v36 = vadd.f32 %v848_v30, %v834_v23  ;;  %v892_v39 = vadd.f32 %v861_v31, %v835_v26 }
 0x462   :  { %v895_v40 = vmul.f32 0.5, %v891_v36  ;;  %v899_v42 = vmul.f32 0.5, %v892_v39 }
 0x464   :  { %1306 = vtanh.f32 %v895_v40 }
 0x465   :  { %1308 = vtanh.f32 %v899_v42 }
 0x466   :  { %v874_v49 = vpop.f32.mrf.mxu2  ;;  %v887_v6 = vpop.f32.mrf.mxu3 }
 0x467   :  { %v893_v59 = vadd.f32 %v874_v49, %v836_v43  ;;  %v894_v60 = vadd.f32 %v887_v6, %v837_v47  ;;  %v850_v61 = vpop.f32.mrf.mxu0  ;;  %v863_v63 = vpop.f32.mrf.mxu1 }
 0x468   :  { %v632_v47 = vpop.permute.xlu1 %631  ;;  %v731_v49 = vpop.permute.xlu2 %730 }
 0x469   :  { %1310 = vtanh.f32 %v893_v59  ;;  %v904_v1 = vmul.f32 0.5, %v894_v60  ;;  %v830_v6 = vpop.permute.xlu0 %829  ;;  %vm732_vm11 = vcmp.eq.s32.totalorder %v731_v49, 1  ;;  %vm633_vm12 = vcmp.eq.s32.totalorder %v632_v47, 1 }
 0x46a   :  { %v1307_v28 = vpop.eup %1306  ;;  %vm831_vm13 = vcmp.eq.s32.totalorder %v830_v6, 1 }
 0x46b   :  { %v1309_v2 = vpop.eup %1308  ;;  %v897_v4 = vadd.f32 1.0, %v1307_v28  ;;  %1312 = vtanh.f32 %v904_v1  ;;  %v337_v28 = vsel %vm336_vm8, %v1660_v37, 0.0 }
 0x46c   :  { %v901_v13 = vadd.f32 1.0, %v1309_v2  ;;  %v436_v2 = vsel %vm435_vm9, %v1707_v0, %v337_v28 }
 0x46d   :  { %v898_v3 = vmul.f32 0.5, %v897_v4 }
 0x46e   :  { %v902_v7 = vmul.f32 0.5, %v901_v13  ;;  %v876_v8 = vpop.f32.mrf.mxu2  ;;  %v889_v12 = vpop.f32.mrf.mxu3  ;;  %v535_v13 = vsel %vm534_vm10, %v1748_v19, %v436_v2 }
 0x46f   :  { %v1311_v16 = vpop.eup %1310 }
 0x470   :  { %v908_v17 = vmul.f32 %v902_v7, %v823_v54  ;;  %v909_v21 = vmul.f32 %v1311_v16, %v898_v3  ;;  %v929_v4 = vpop.permute.xlu1 %928  ;;  %v1018_v3 = vpop.permute.xlu2 %1017  ;;  %v634_v16 = vsel %vm633_vm12, %v1797_v48, %v535_v13 }
 0x471   :  { %v1313_v25 = vpop.eup %1312  ;;  %v1027_v12 = vpop.permute.xlu0 %1026  ;;  %v733_v37 = vsel %vm732_vm11, %v1838_v11, %v634_v16  ;;  %vm930_vm14 = vcmp.eq.s32.totalorder %v929_v4, 1  ;;  %vm1019_vm15 = vcmp.eq.s32.totalorder %v1018_v3, 1 }
 0x472   :  { %v910_v33 = vadd.f32 %v909_v21, %v908_v17  ;;  %v906_v38 = vadd.f32 1.0, %v1313_v25  ;;  %v832_v19 = vsel %vm831_vm13, %v1877_v55, %v733_v37  ;;  %vm1028_vm0 = vcmp.eq.s32.totalorder %v1027_v12, 1 }
 0x474   :  { %1314 = vtanh.f32 %v910_v33  ;;  %v922_v34 = vsel %vm920_vm7, %v910_v33, %v823_v54  ;;  %v907_v44 = vmul.f32 0.5, %v906_v38 }
 0x47a   :  { %v1315_v45 = vpop.eup %1314 }
 0x47b   :  { %v912_v46 = vmul.f32 %v1315_v45, %v907_v44 }
 0x47d   :  { %v1882_v50 = vsel %vm920_vm7, %v912_v46, %v1877_v55 }
 0x47e   :  { %v937_v56 = vpack.c.bf16 %v1882_v50, %v1882_v50  ;;  %v931_v17 = vsel %vm930_vm14, %v1882_v50, %v832_v19 }
 0x480   :  { %946 = vmatmul.bf16.vlgmr.msrb.gmra.mxu0 %v937_v56  ;;  %959 = vmatmul.bf16.vlgmr.msrb.gmra.mxu1 %v937_v56 }
 0x481   :  { %972 = vmatmul.bf16.vlgmr.msrb.gmra.mxu2 %v937_v56  ;;  %985 = vmatmul.bf16.vlgmr.msrb.gmra.mxu3 %v937_v56 }
 0x4fd   :  { %v947_v62 = vpop.f32.mrf.mxu0  ;;  %v960_v5 = vpop.f32.mrf.mxu1 }
 0x4fe   :  { %v990_v9 = vadd.f32 %v947_v62, %v933_v57  ;;  %v991_v10 = vadd.f32 %v960_v5, %v934_v58 }
 0x500   :  { %v994_v15 = vmul.f32 0.5, %v990_v9  ;;  %v998_v27 = vmul.f32 0.5, %v991_v10 }
 0x502   :  { %1316 = vtanh.f32 %v994_v15 }
 0x503   :  { %1318 = vtanh.f32 %v998_v27 }
 0x504   :  { %v973_v53 = vpop.f32.mrf.mxu2  ;;  %v986_v54 = vpop.f32.mrf.mxu3 }
 0x505   :  { %v992_v24 = vadd.f32 %v973_v53, %v935_v35  ;;  %v993_v14 = vadd.f32 %v986_v54, %v936_v41  ;;  %v949_v18 = vpop.f32.mrf.mxu0  ;;  %v962_v20 = vpop.f32.mrf.mxu1 }
 0x507   :  { %1320 = vtanh.f32 %v992_v24  ;;  %v1003_v22 = vmul.f32 0.5, %v993_v14 }
 0x508   :  { %v1317_v23 = vpop.eup %1316 }
 0x509   :  { %v1319_v26 = vpop.eup %1318  ;;  %v996_v30 = vadd.f32 1.0, %v1317_v23  ;;  %1322 = vtanh.f32 %v1003_v22 }
 0x50a   :  { %v1000_v31 = vadd.f32 1.0, %v1319_v26 }
 0x50b   :  { %v997_v36 = vmul.f32 0.5, %v996_v30 }
 0x50c   :  { %v1001_v39 = vmul.f32 0.5, %v1000_v31  ;;  %v975_v40 = vpop.f32.mrf.mxu2  ;;  %v988_v42 = vpop.f32.mrf.mxu3 }
 0x50d   :  { %v1321_v43 = vpop.eup %1320 }
 0x50e   :  { %v1007_v59 = vmul.f32 %v1001_v39, %v922_v34  ;;  %v1008_v60 = vmul.f32 %v1321_v43, %v997_v36 }
 0x50f   :  { %v1323_v61 = vpop.eup %1322 }
 0x510   :  { %v1009_v63 = vadd.f32 %v1008_v60, %v1007_v59  ;;  %v1005_v1 = vadd.f32 1.0, %v1323_v61 }
 0x512   :  { %1324 = vtanh.f32 %v1009_v63  ;;  %v1006_v7 = vmul.f32 0.5, %v1005_v1 }
 0x518   :  { %v1325_v8 = vpop.eup %1324 }
 0x519   :  { %v1011_v0 = vmul.f32 %v1325_v8, %v1006_v7 }
 0x51b   :  { %v1020_v21 = vsel %vm1019_vm15, %v1011_v0, %v1882_v50 }
 0x51c   :  { %v1029_v48 = vsel %vm1028_vm0, %v1020_v21, %v931_v17 }
 0x51d   :  { %1030 = vst [vmem:[#allocation7] sm:$0xff] %v1029_v48 }
 0x51e   :  { %1041 = dma.vmem_to_hbm [thread:$0]  %s1037_s3, 128, %s1039_s7, [#allocation4]  }
 0x51f   :  { %1402 = dma.done.wait [#allocation4], 128  }
 0x520   :  { %1403 = vsyncadd [#allocation4], 4294967168 }
 0x521   :  { %1046 = vsyncpa [#allocation3], 1 }
 0x522   :  { %1047 = vsyncpa [#allocation6], 1 }
 0x523   :  { %1048 = vsyncpa [#allocation4], 1 }

</bundles_post_ra>
